<compile_context>
chip_gen: v7x
topology: tpu7x:2x2x1
jax: 0.10.0
libtpu: 0.0.40
codegen_flags: <defaults>
</compile_context>

<pallas_src>
import functools
import math

import jax
import jax.numpy as jnp
from jax.experimental import pallas as pl
from jax.experimental.pallas import tpu as pltpu


# --------------------------------------------------------------------------
# Pallas kernels
# --------------------------------------------------------------------------
def _mm_kernel(a_ref, b_ref, bias_ref, o_ref, acc_ref, *, relu):
    @pl.when(pl.program_id(2) == 0)
    def _():
        acc_ref[...] = jnp.zeros_like(acc_ref)

    acc_ref[...] += jnp.dot(a_ref[...], b_ref[...],
                            preferred_element_type=jnp.float32)

    @pl.when(pl.program_id(2) == pl.num_programs(2) - 1)
    def _():
        r = acc_ref[...] + bias_ref[...]
        if relu:
            r = jnp.maximum(r, 0.0)
        o_ref[...] = r.astype(o_ref.dtype)


def _maxpair_kernel(x_ref, o_ref, *, half):
    v = x_ref[...]
    o_ref[...] = jnp.maximum(v[:, :half], v[:, half:])


def _pick_tile(dim, unit, max_units):
    """Return (tile, padded_dim): tile multiple of `unit`, divides padded dim."""
    n_units = -(-dim // unit)
    for u in range(min(max_units, n_units), 0, -1):
        if n_units % u == 0:
            return u * unit, n_units * unit
    return unit, n_units * unit


def _pick_rows(R, row_bytes, cap=2 << 20):
    """Largest row-tile (multiple of 16) dividing R that fits `cap` bytes."""
    limit = max(16, min(R, cap // max(row_bytes, 1)))
    start = limit - (limit % 16)
    for rt in range(start, 15, -16):
        if R % rt == 0:
            return rt
    return R


_VMEM_LIMIT = 48 * 1024 * 1024   # sized for v7x (64 MiB physical), fine on v5e/v6e


@functools.lru_cache(maxsize=None)
def _build_matmul(Mp, Kp, Np, tm, tk, tn, relu, out_dtype_name):
    out_dtype = jnp.dtype(out_dtype_name)
    kern = functools.partial(_mm_kernel, relu=relu)
    call = pl.pallas_call(
        kern,
        out_shape=jax.ShapeDtypeStruct((Mp, Np), out_dtype),
        grid_spec=pltpu.PrefetchScalarGridSpec(
            num_scalar_prefetch=0,
            grid=(Mp // tm, Np // tn, Kp // tk),
            in_specs=[pl.BlockSpec((tm, tk), lambda i, j, k: (i, k)),
                      pl.BlockSpec((tk, tn), lambda i, j, k: (k, j)),
                      pl.BlockSpec((1, tn), lambda i, j, k: (0, j))],
            out_specs=pl.BlockSpec((tm, tn), lambda i, j, k: (i, j)),
            scratch_shapes=[pltpu.VMEM((tm, tn), jnp.float32)],
        ),
        compiler_params=pltpu.CompilerParams(
            dimension_semantics=("parallel", "parallel", "arbitrary"),
            vmem_limit_bytes=_VMEM_LIMIT),
    )
    return jax.jit(call)


@functools.lru_cache(maxsize=None)
def _build_maxpair(R, half, rt, dtype_name):
    dtype = jnp.dtype(dtype_name)
    kern = functools.partial(_maxpair_kernel, half=half)
    call = pl.pallas_call(
        kern,
        out_shape=jax.ShapeDtypeStruct((R, half), dtype),
        grid=(R // rt,),
        in_specs=[pl.BlockSpec((rt, 2 * half), lambda i: (i, 0))],
        out_specs=pl.BlockSpec((rt, half), lambda i: (i, 0)),
        compiler_params=pltpu.CompilerParams(
            dimension_semantics=("parallel",),
            vmem_limit_bytes=_VMEM_LIMIT),
    )
    return jax.jit(call)


def matmul_bias(a, b, bias=None, relu=False, out_dtype=jnp.float32):
    """out = a @ b + bias with optional fused ReLU.

    a:(M,K) b:(K,N) bias:(N,). Pallas path uses bf16 inputs + f32 accumulator.
    Tiny problems fall back to plain JAX (pure launch/pad overhead otherwise).
    """
    M, K = a.shape
    K2, N = b.shape
    assert K == K2
    if bias is None:
        bias = jnp.zeros((N,), jnp.float32)
    bias = bias.astype(jnp.float32)

    if M * K * N < (1 << 20):          # tiny: plain JAX (heads, etc.)
        out = jnp.dot(a.astype(jnp.float32), b.astype(jnp.float32),
                      preferred_element_type=jnp.float32) + bias
        if relu:
            out = jnp.maximum(out, 0.0)
        return out.astype(out_dtype)

    a = a.astype(jnp.bfloat16)
    b = b.astype(jnp.bfloat16)

    tm, Mp = _pick_tile(M, 16, 32)         # M tile up to 512 (bf16 sublane=16)
    tk, Kp = _pick_tile(K, 128, 8)         # K tile up to 1024
    if N % 128 == 0:
        tn, Np = _pick_tile(N, 128, 4)     # N tile up to 512
        # Keep >=2 parallel tiles when the M grid collapses (v7x has 2 TCs).
        if Mp // tm == 1 and Np // tn == 1 and Np % 256 == 0:
            tn = Np // 2
    else:
        tn, Np = N, N                      # narrow lane output, no pad/slice

    if (Mp, Kp) != (M, K):
        a = jnp.pad(a, ((0, Mp - M), (0, Kp - K)))
    if (Kp, Np) != (K, N):
        b = jnp.pad(b, ((0, Kp - K), (0, Np - N)))
    bias_p = bias if Np == N else jnp.pad(bias, (0, Np - N))

    out = _build_matmul(Mp, Kp, Np, tm, tk, tn, bool(relu),
                        jnp.dtype(out_dtype).name)(a, b, bias_p.reshape(1, Np))
    if (Mp, Np) != (M, N):
        out = out[:M, :N]
    return out


def _maxpair(x2d, half):
    """Row-wise max of the two lane halves of x2d (R, 2*half) -> (R, half)."""
    R = x2d.shape[0]
    rt = _pick_rows(R, 2 * half * x2d.dtype.itemsize)
    return _build_maxpair(R, half, rt, x2d.dtype.name)(x2d)


# --------------------------------------------------------------------------
# NN building blocks on top of the Pallas kernels
# --------------------------------------------------------------------------
def conv2d(x, wmat, bias, kh, kw, padding=0, relu=False, out_dtype=None):
    """x: (N,H,W,C) NHWC ; wmat: (Kp, O) pre-packed (ki,kj,c)-ordered, bf16."""
    if out_dtype is None:
        out_dtype = x.dtype
    N, H, W, C = x.shape
    if isinstance(padding, int):
        pad_h = pad_w = (padding, padding)
    else:
        pad_h, pad_w = padding
    if pad_h != (0, 0) or pad_w != (0, 0):
        x = jnp.pad(x, ((0, 0), pad_h, pad_w, (0, 0)))
    Ho = H + sum(pad_h) - kh + 1
    Wo = W + sum(pad_w) - kw + 1
    K = kh * kw * C
    Kp, O = wmat.shape

    if kh == 1 and kw == 1 and Kp == K and pad_h == (0, 0) and pad_w == (0, 0):
        patches = x.reshape(N * Ho * Wo, K)            # pure reshape, no copy
    else:
        cols = [x[:, i:i + Ho, j:j + Wo, :] for i in range(kh) for j in range(kw)]
        if Kp > K:                                     # align K in the SAME concat
            cols.append(jnp.zeros((N, Ho, Wo, Kp - K), x.dtype))
        patches = jnp.concatenate(cols, axis=-1).reshape(N * Ho * Wo, Kp)

    out = matmul_bias(patches, wmat, bias, relu=relu, out_dtype=out_dtype)
    return out.reshape(N, Ho, Wo, O)


def conv_transpose2x2(x, phase_wmats, bias, relu=False, out_dtype=None):
    """ConvTranspose2d(k=4, stride=2, pad=1) via sub-pixel decomposition:
    4 phase convs (2x2 kernels, asymmetric pad) on the undilated input."""
    if out_dtype is None:
        out_dtype = x.dtype
    N, H, W, _ = x.shape
    Cout = phase_wmats[0].shape[1]
    pads = (((1, 0), (1, 0)), ((1, 0), (0, 1)),
            ((0, 1), (1, 0)), ((0, 1), (0, 1)))        # (a,b) = 00,01,10,11
    phases = [conv2d(x, wm, bias, 2, 2, padding=pad, relu=relu,
                     out_dtype=out_dtype)
              for wm, pad in zip(phase_wmats, pads)]
    st = jnp.stack(phases, axis=3)                     # (N,H,W,4,Cout)
    st = st.reshape(N, H, W, 2, 2, Cout)
    out = jnp.transpose(st, (0, 1, 3, 2, 4, 5)).reshape(N, 2 * H, 2 * W, Cout)
    return out


def maxpool2x2(x):
    """2x2 / stride-2 max pool (NHWC): two lane-halved max passes (W then H)."""
    N, H, W, C = x.shape
    Ho, Wo = H // 2, W // 2
    y = _maxpair(x.reshape(N * H * Wo, 2 * C), C)            # pool along W
    y = _maxpair(y.reshape(N * Ho, 2 * Wo * C), Wo * C)      # pool along H
    return y.reshape(N, Ho, Wo, C)


def _pool_mat(n_in, n_out):
    m = [[0.0] * n_out for _ in range(n_in)]
    for o in range(n_out):
        s = (o * n_in) // n_out
        e = -(-((o + 1) * n_in) // n_out)
        for i in range(s, e):
            m[i][o] = 1.0 / (e - s)
    return jnp.array(m, jnp.float32)


def adaptive_avg_pool(x, out_hw):
    """nn.AdaptiveAvgPool2d semantics (NHWC). Small glue op in plain JAX."""
    N, H, W, C = x.shape
    oh, ow = out_hw
    return jnp.einsum('nhwc,ho,wp->nopc', x, _pool_mat(H, oh), _pool_mat(W, ow))


def graph_convolution(x, adj, W, b, relu=False):
    """GraphConvolution: out[i] = adj @ (x[i] @ W) + b (tiny, plain JAX)."""
    sup = jnp.einsum('blf,fo->blo', x.astype(jnp.float32), W)
    out = jnp.einsum('lk,bko->blo', adj, sup) + b
    if relu:
        out = jnp.maximum(out, 0.0)
    return out


# --------------------------------------------------------------------------
# Parameters (deterministic synthetic init) + packing to kernel layouts
# --------------------------------------------------------------------------
NUM_CATEGORY = 50
NUM_ATTRIBUTE = 1000

_VGG_CFG = [(3, 64), (64, 64),
            (64, 128), (128, 128),
            (128, 256), (256, 256), (256, 256),
            (256, 512), (512, 512), (512, 512),
            (512, 512), (512, 512), (512, 512)]
_VGG_BLOCKS = [2, 2, 3, 3, 3]

# decoder `up`: ('c', Cin, Cout, k, pad, relu) or ('t', Cin, Cout, relu)
_UP_CFG = [('c', 512, 64, 1, 0, True),
           ('c', 64, 64, 3, 1, True),
           ('c', 64, 64, 3, 1, True),
           ('c', 64, 128, 3, 1, True),
           ('t', 128, 64, True),
           ('c', 64, 64, 3, 1, True),
           ('c', 64, 64, 3, 1, True),
           ('t', 64, 32, True),
           ('c', 32, 32, 3, 1, True),
           ('c', 32, 32, 3, 1, True),
           ('t', 32, 16, True),
           ('c', 16, 16, 3, 1, True),
           ('c', 16, 8, 1, 0, False)]


def init_params(key):
    keys = iter(jax.random.split(key, 128))

    def conv_w(cin, cout, k):
        fan_in = cin * k * k
        return (jax.random.normal(next(keys), (cout, cin, k, k), jnp.float32)
                * math.sqrt(2.0 / fan_in))

    def convT_w(cin, cout, k):
        fan_in = cin * k * k
        return (jax.random.normal(next(keys), (cin, cout, k, k), jnp.float32)
                * math.sqrt(2.0 / fan_in))

    def lin(fin, fout):
        w = (jax.random.normal(next(keys), (fin, fout), jnp.float32)
             * math.sqrt(2.0 / fin))
        return w, jnp.zeros((fout,), jnp.float32)

    def gcn(fin, fout):
        stdv = 1.0 / math.sqrt(fout)
        w = jax.random.uniform(next(keys), (fin, fout), jnp.float32, -stdv, stdv)
        b = jax.random.uniform(next(keys), (fout,), jnp.float32, -stdv, stdv)
        return w, b

    params = {}
    params['vgg'] = [(conv_w(ci, co, 3), jnp.zeros((co,), jnp.float32))
                     for ci, co in _VGG_CFG]
    up = []
    for layer in _UP_CFG:
        if layer[0] == 'c':
            _, ci, co, k, _, _ = layer
            up.append((conv_w(ci, co, k), jnp.zeros((co,), jnp.float32)))
        else:
            _, ci, co, _ = layer
            up.append((convT_w(ci, co, 4), jnp.zeros((co,), jnp.float32)))
    params['up'] = up
    params['gc1'] = gcn(512, 16)
    params['gc2'] = gcn(16, 256)
    params['cls2_1'] = lin(512 * 7 * 7, 4096)
    params['cls2_2'] = lin(4096, 2048)
    params['cls_4096_512'] = lin(4096, 512)
    params['cls_category'] = lin(512, NUM_CATEGORY)
    params['cls_attribute'] = lin(512, NUM_ATTRIBUTE * 2)
    return params


def prepare_params(params):
    """One-time packing: conv weights -> (Kp,O) bf16 matmul layout, transpose
    conv weights -> 4 sub-pixel phase matrices, FC weights -> bf16."""
    def conv_pack(w, b):
        O, C, kh, kw = w.shape
        K = kh * kw * C
        Kp = -(-K // 128) * 128
        wm = jnp.transpose(w, (2, 3, 1, 0)).reshape(K, O)
        if Kp > K:
            wm = jnp.pad(wm, ((0, Kp - K), (0, 0)))
        return (wm.astype(jnp.bfloat16), b.astype(jnp.float32), kh, kw)

    prep = {'vgg': [conv_pack(w, b) for (w, b) in params['vgg']]}

    up = []
    for layer, (w, b) in zip(_UP_CFG, params['up']):
        if layer[0] == 'c':
            _, _, _, _, pad, relu = layer
            up.append(('c', conv_pack(w, b), pad, relu))
        else:
            relu = layer[3]
            mats = []
            for a in (0, 1):                      # output row phase
                ridx = (3, 1) if a == 0 else (2, 0)
                for bb in (0, 1):                 # output col phase
                    cidx = (3, 1) if bb == 0 else (2, 0)
                    parts = [w[:, :, ridx[di], cidx[dj]]      # each (Cin,Cout)
                             for di in (0, 1) for dj in (0, 1)]
                    wm = jnp.concatenate(parts, axis=0)       # (4*Cin, Cout)
                    K = wm.shape[0]
                    Kp = -(-K // 128) * 128
                    if Kp > K:
                        wm = jnp.pad(wm, ((0, Kp - K), (0, 0)))
                    mats.append(wm.astype(jnp.bfloat16))
            up.append(('t', mats, b.astype(jnp.float32), relu))
    prep['up'] = up

    prep['gc1'] = params['gc1']
    prep['gc2'] = params['gc2']
    prep['cls_category'] = params['cls_category']             # tiny, stays f32
    for k in ('cls2_1', 'cls2_2', 'cls_4096_512', 'cls_attribute'):
        w, b = params[k]
        prep[k] = (w.astype(jnp.bfloat16), b.astype(jnp.float32))
    return prep


# --------------------------------------------------------------------------
# Forward pass (model_vgg16_all_v3.forward)
# --------------------------------------------------------------------------
def forward(params, x_nchw, landmarks, adj):
    # `landmarks` is accepted but unused, exactly as in the reference forward.
    del landmarks
    ret = {}
    B = x_nchw.shape[0]

    h = jnp.transpose(x_nchw, (0, 2, 3, 1)).astype(jnp.bfloat16)   # -> NHWC bf16

    # ---- VGG16 feature extractor (need conv4_3 and pooled_5) ----
    conv4_3 = None
    li = 0
    for bi, nconv in enumerate(_VGG_BLOCKS):
        for ci in range(nconv):
            wm, b, kh, kw = params['vgg'][li]
            h = conv2d(h, wm, b, kh, kw, padding=1, relu=True)
            li += 1
            if bi == 3 and ci == 2:            # features index '22' -> conv4_3
                conv4_3 = h
        h = maxpool2x2(h)
    pooled_5 = h                               # features index '30' -> pooled_5

    # ---- decoder `up` on conv4_3 -> landmark heat maps ----
    u = conv4_3
    nup = len(params['up'])
    for idx, layer in enumerate(params['up']):
        odt = jnp.float32 if idx == nup - 1 else jnp.bfloat16
        if layer[0] == 'c':
            _, (wm, b, kh, kw), pad, relu = layer
            u = conv2d(u, wm, b, kh, kw, padding=pad, relu=relu, out_dtype=odt)
        else:
            _, mats, b, relu = layer
            u = conv_transpose2x2(u, mats, b, relu=relu, out_dtype=odt)

    lm_pos_map = jnp.transpose(u, (0, 3, 1, 2))        # NCHW (B, 8, H, W), f32
    _, _, pred_h, pred_w = lm_pos_map.shape
    flat = lm_pos_map.reshape(B, 8, pred_h * pred_w)
    idx = jnp.argmax(flat, axis=2)
    lm_pos_y = idx // pred_w
    lm_pos_x = idx % pred_w
    lm_pos_output = jnp.stack([lm_pos_x, lm_pos_y], axis=2)        # (B, 8, 2)
    ret['lm_pos_map'] = lm_pos_map
    ret['lm_pos_output'] = lm_pos_output

    # ---- landmark-conditioned feature gather from pooled_5 ----
    x_mid = pooled_5                                   # NHWC (B, hm, wm, 512)
    hm, wm_ = x_mid.shape[1], x_mid.shape[2]
    b_idx = jnp.arange(B)[:, None]
    j_idx = jnp.arange(8)[None, :]
    # reference indexes lm_pos_map[i][j][xxx][yyy] with (xxx=col, yyy=row) and
    # hard-codes /224.0; reproduce that (transposed) indexing exactly.
    gate = lm_pos_map[b_idx, j_idx, lm_pos_x, lm_pos_y]
    xs = jnp.floor(lm_pos_x.astype(jnp.float32) / 224.0 * hm).astype(jnp.int32)
    ys = jnp.floor(lm_pos_y.astype(jnp.float32) / 224.0 * wm_).astype(jnp.int32)
    feats = x_mid[b_idx, xs, ys, :]                    # (B, 8, 512)
    x1 = jnp.where((gate < 0.0)[..., None], 0.0, feats)

    # ---- graph convolutions (tiny; plain JAX) ----
    w1, b1 = params['gc1']
    x1 = graph_convolution(x1, adj, w1, b1, relu=True)     # F.relu(gc1(...))
    # F.dropout(p=0.5) in eval mode == identity
    w2, b2 = params['gc2']
    x1 = graph_convolution(x1, adj, w2, b2, relu=False)
    x1 = x1.reshape(B, 8 * 256)

    # ---- global branch ----
    x2 = adaptive_avg_pool(x_mid.astype(jnp.float32), (7, 7))     # (B,7,7,512)
    x2 = jnp.transpose(x2, (0, 3, 1, 2)).reshape(B, 512 * 7 * 7)  # NCHW flatten
    w, b = params['cls2_1']
    x2 = matmul_bias(x2, w, b, relu=True)
    w, b = params['cls2_2']
    x2 = matmul_bias(x2, w, b, relu=False)               # (B, 2048)

    # ---- heads ----
    x_cat = jnp.concatenate([x1, x2], axis=1)            # (B, 4096)
    w, b = params['cls_4096_512']
    x_cat = matmul_bias(x_cat, w, b, relu=True)           # (B, 512)
    w, b = params['cls_category']
    x_category = matmul_bias(x_cat, w, b, relu=False)     # (B, 50)  (JAX path)
    w, b = params['cls_attribute']
    x_attribute = matmul_bias(x_cat, w, b, relu=False)    # (B, 2000)
    x_attribute = x_attribute.reshape(B, 2, NUM_ATTRIBUTE)

    ret['category_output'] = x_category
    ret['attr_output'] = x_attribute
    ret['features'] = x_cat
    return ret


# --------------------------------------------------------------------------
if __name__ == "__main__":
    key = jax.random.PRNGKey(0)
    kp, kx, kl, ka = jax.random.split(key, 4)

    params = prepare_params(init_params(kp))

    B, IMG = 2, 64   # small spatial size (must be a multiple of 32); NCHW input
    x = jax.random.normal(kx, (B, 3, IMG, IMG), jnp.float32)
    landmarks = jax.random.normal(kl, (B, 8, 2), jnp.float32)   # unused by forward
    adj = jax.random.uniform(ka, (8, 8), jnp.float32)
    adj = adj / jnp.sum(adj, axis=1, keepdims=True)             # row-normalized

    ret = forward(params, x, landmarks, adj)
    ret = jax.block_until_ready(ret)

    assert ret['lm_pos_map'].shape == (B, 8, IMG, IMG)
    assert ret['lm_pos_output'].shape == (B, 8, 2)
    assert ret['category_output'].shape == (B, NUM_CATEGORY)
    assert ret['attr_output'].shape == (B, 2, NUM_ATTRIBUTE)
    assert ret['features'].shape == (B, 512)
    assert all(bool(jnp.all(jnp.isfinite(v))) for v in
               [ret['lm_pos_map'], ret['category_output'],
                ret['attr_output'], ret['features']])

    print("KERNEL_OK")
</pallas_src>

<mosaic_0001>
module attributes {stable_mosaic.version = 11 : i64} {
  func.func @_mm_kernel(%arg0: i32, %arg1: i32, %arg2: i32, %arg3: memref<512x128xbf16, #tpu.memory_space<vmem>>, %arg4: memref<128x64xbf16, #tpu.memory_space<vmem>>, %arg5: memref<1x64xf32, #tpu.memory_space<vmem>>, %arg6: memref<512x64xbf16, #tpu.memory_space<vmem>>, %arg7: memref<512x64xf32, #tpu.memory_space<vmem>>) attributes {dimension_semantics = [#tpu.dimension_semantics<parallel>, #tpu.dimension_semantics<parallel>, #tpu.dimension_semantics<arbitrary>], iteration_bounds = array<i64: 16, 1, 1>, scalar_prefetch = 0 : i64, scratch_operands = 1 : i64, tpu.core_type = #tpu.core_type<tc>, window_params = [{transform_indices = @transform_0, window_bounds = array<i64: 512, 128>}, {transform_indices = @transform_1, window_bounds = array<i64: 128, 64>}, {transform_indices = @transform_2, window_bounds = array<i64: 1, 64>}, {transform_indices = @transform_3, window_bounds = array<i64: 512, 64>}]} {
    %c0_i32 = arith.constant 0 : i32
    %0 = arith.cmpi eq, %arg2, %c0_i32 : i32
    %1 = arith.extui %0 : i1 to i32
    %c0_i32_0 = arith.constant 0 : i32
    %2 = arith.cmpi ne, %1, %c0_i32_0 : i32
    scf.if %2 {
      %cst_10 = arith.constant 0.000000e+00 : f32
      %12 = vector.broadcast %cst_10 : f32 to vector<512x64xf32>
      %c0_11 = arith.constant 0 : index
      %c0_12 = arith.constant 0 : index
      %13 = vector.load %arg7[%c0_11, %c0_12] : memref<512x64xf32, #tpu.memory_space<vmem>>, vector<512x64xf32>
      tpu.vector_store %arg7[%c0_11, %c0_12], %12 {strides = array<i32>} : memref<512x64xf32, #tpu.memory_space<vmem>>, vector<512x64xf32>,
    } else {
    }
    %c0 = arith.constant 0 : index
    %c0_1 = arith.constant 0 : index
    %3 = vector.load %arg7[%c0, %c0_1] : memref<512x64xf32, #tpu.memory_space<vmem>>, vector<512x64xf32>
    %c0_2 = arith.constant 0 : index
    %c0_3 = arith.constant 0 : index
    %4 = vector.load %arg3[%c0_2, %c0_3] : memref<512x128xbf16, #tpu.memory_space<vmem>>, vector<512x128xbf16>
    %c0_4 = arith.constant 0 : index
    %c0_5 = arith.constant 0 : index
    %5 = vector.load %arg4[%c0_4, %c0_5] : memref<128x64xbf16, #tpu.memory_space<vmem>>, vector<128x64xbf16>
    %cst = arith.constant dense<0.000000e+00> : vector<512x64xf32>
    %6 = tpu.matmul %4, %5, %cst {dimension_numbers = #tpu.dot_dimension_numbers<[1], [0], [0], [1], [0, 0, 1, 1], [], []>} : vector<512x128xbf16>, vector<128x64xbf16>, vector<512x64xf32> -> vector<512x64xf32>
    %7 = arith.addf %3, %6 : vector<512x64xf32>
    %c0_6 = arith.constant 0 : index
    %c0_7 = arith.constant 0 : index
    %8 = vector.load %arg7[%c0_6, %c0_7] : memref<512x64xf32, #tpu.memory_space<vmem>>, vector<512x64xf32>
    tpu.vector_store %arg7[%c0_6, %c0_7], %7 {strides = array<i32>} : memref<512x64xf32, #tpu.memory_space<vmem>>, vector<512x64xf32>,
    %c0_i32_8 = arith.constant 0 : i32
    %9 = arith.cmpi eq, %arg2, %c0_i32_8 : i32
    %10 = arith.extui %9 : i1 to i32
    %c0_i32_9 = arith.constant 0 : i32
    %11 = arith.cmpi ne, %10, %c0_i32_9 : i32
    scf.if %11 {
      %c0_10 = arith.constant 0 : index
      %c0_11 = arith.constant 0 : index
      %12 = vector.load %arg7[%c0_10, %c0_11] : memref<512x64xf32, #tpu.memory_space<vmem>>, vector<512x64xf32>
      %c0_12 = arith.constant 0 : index
      %c0_13 = arith.constant 0 : index
      %13 = vector.load %arg5[%c0_12, %c0_13] : memref<1x64xf32, #tpu.memory_space<vmem>>, vector<1x64xf32>
      %14 = vector.broadcast %13 : vector<1x64xf32> to vector<512x64xf32>
      %15 = arith.addf %12, %14 : vector<512x64xf32>
      %cst_14 = arith.constant 0.000000e+00 : f32
      %16 = vector.broadcast %cst_14 : f32 to vector<512x64xf32>
      %17 = arith.maximumf %15, %16 : vector<512x64xf32>
      %18 = arith.truncf %17 : vector<512x64xf32> to vector<512x64xbf16>
      %c0_15 = arith.constant 0 : index
      %c0_16 = arith.constant 0 : index
      %19 = vector.load %arg6[%c0_15, %c0_16] : memref<512x64xbf16, #tpu.memory_space<vmem>>, vector<512x64xbf16>
      tpu.vector_store %arg6[%c0_15, %c0_16], %18 {strides = array<i32>} : memref<512x64xbf16, #tpu.memory_space<vmem>>, vector<512x64xbf16>,
    } else {
    }
    return
  }
  func.func @transform_0(%arg0: i32, %arg1: i32, %arg2: i32) -> (i32, i32) {
    %c0_i32 = arith.constant 0 : i32
    return %arg0, %arg2 : i32, i32
  }
  func.func @transform_1(%arg0: i32, %arg1: i32, %arg2: i32) -> (i32, i32) {
    %c0_i32 = arith.constant 0 : i32
    return %arg2, %arg1 : i32, i32
  }
  func.func @transform_2(%arg0: i32, %arg1: i32, %arg2: i32) -> (i32, i32) {
    %c0_i32 = arith.constant 0 : i32
    %c0_i32_0 = arith.constant 0 : i32
    return %c0_i32, %arg1 : i32, i32
  }
  func.func @transform_3(%arg0: i32, %arg1: i32, %arg2: i32) -> (i32, i32) {
    %c0_i32 = arith.constant 0 : i32
    return %arg0, %arg1 : i32, i32
  }
}

</mosaic_0001>

<bundles_post_ra>
// kernel: tpu_custom_call.1
= control target key start
LH: loop header
LB: loop body
LE: loop exit
PB: predicated region body
PF: predicated region fallthrough
CT: control target
= control target key end

     0   :  { %8 = vsyncpa [#allocation4], 0  ;;  %s2987_s0 = inlined_call_operand.hbm [shape: bf16[8192,128], index: 0, kind: input, shape index: {}]   ;;  %s2988_s1 = inlined_call_operand.vmem [shape: bf16[128,64], index: 1, kind: input, shape index: {}]   ;;  %s2989_s2 = inlined_call_operand.hbm [shape: f32[1,64], index: 2, kind: input, shape index: {}]   ;;  %s2990_s3 = inlined_call_operand.vmem [shape: bf16[8192,64], index: 3, kind: output, shape index: {}]  }
   0x1   :  { %10 = vsyncpa [#allocation4 + $0x1], 0 }
   0x2   :  { %11 = vsyncpa [#allocation6], 0  ;;  %s2363_s12 = smov 0   ;;  %s2365_s13 = smov 0  }
   0x3   :  { %s2367_s14 = smov 0   ;;  %s2369_s15 = smov 0  }
   0x4   :  { %s2371_s16 = smov 0   ;;  %s2373_s17 = smov 0  }
   0x5 LB: > { %s1792_s18 = sadd.s32 4294967295, %s2336_s17   ;;  %s45_s19 = sadd.s32 1, %s2324_s14  ;;  %s2336_s17 = sphi %s2373_s17, %s17_s17   ;;  %s2332_s16 = sphi %s2371_s16, %s3012_s16   ;;  %s2328_s15 = sphi %s2369_s15, %s3011_s15   ;;  %s2324_s14 = sphi %s2367_s14, %s3010_s14   ;;  %s2320_s13 = sphi %s2365_s13, %s3009_s13   ;;  %s2316_s12 = sphi %s2363_s12, %s3008_s12  }
   0x6   : > { %p52_p0 = scmp.ne.s32.totalorder %s2324_s14, %s2320_s13  ;;  %p53_p1 = scmp.eq.s32.totalorder %s2336_s17, 0 }
   0x7   : > { %p58_p2 = scmp.ne.s32.totalorder %s2320_s13, %s2316_s12  ;;  %p2397_p3 = scmp.eq.s32.totalorder %s1792_s18, 0 }
   0x8   : > { %p54_p4 = por %p53_p1, %p52_p0  ;;  %p1794_p5 = scmp.ge.s32.totalorder %s2336_s17, 1 }
   0x9   : > { %s2996_s20 = scalar_select %p2397_p3, 1, 0 }
   0xa   : > { %p2404_p6 = por %p2397_p3, %p58_p2  ;;  %p151_p7 = scmp.lt.s32.totalorder %s2336_s17, 17 }
   0xb   : > { %s2338_s23 = smov [#allocation5]   ;;  %p2129_p10 = scmp.lt.s32.totalorder %s2336_s17, 16 }
   0xc   : > { %s2997_s21 = scalar_select %p2404_p6, 1, 0 }
   0xd   : > { %p2409_p8 = pnand %p1794_p5, %p151_p7  ;;  %s178_s24 = sshll.u32 %s2338_s23, 4  ;;  %s179_s24 = int_to_ptr.vmem [resolvable:$true] %s178_s24 }
   0xe   : > { %s189_s25 = sand.u32 1, %s2324_s14   ;;  %p2423_p12 = pnand %p2129_p10, %p54_p4 }
   0xf   : > { %s2998_s22 = scalar_select %p2409_p8, 1, 0 }
  0x10   : > { %p2120_p9 = pneg %p2409_p8  ;;  %s2224_s30 = scalar_lea.hbm %s2989_s2, 16 }
  0x11   : > { %s3000_s27 = scalar_select %p2423_p12, 1, 0 }
  0x12   : > { %p2419_p11 = pnand %p2120_p9, %p2397_p3  ;;  %p2225_p13 = scmp.ne.s32.totalorder %s2989_s2, %s2224_s30 }
  0x13   : > { %p2231_p5 = scmp.lt.u32.totalorder %s2224_s30, %s2989_s2 }
  0x14   : > { %p2226_p0 = pneg %p2419_p11 }
  0x16   : > { %p2227_p1 = pnand %p2226_p0, %p2225_p13 }
  0x18   : > { %p2228_p2 = pneg %p2227_p1 }
  0x1a   : > { %p2233_p4 = pnand %p2231_p5, %p2228_p2 }
  0x1c   : > { %2236 = shalt.err (!%p2233_p4)
}
  0x1d   : > { %s2237_s8 = scalar_lea.vmem %s179_s24, 16  ;;  %s2244_s9 = scalar_lea.vmem %s179_s24, 32 }
  0x1e   : > { %p2238_p7 = scmp.ne.s32.totalorder %s179_s24, %s2237_s8  ;;  %p2245_p3 = scmp.lt.s32.totalorder %s179_s24, %s179_s24 }
  0x1f   : > { %p2246_p6 = scmp.lt.s32.totalorder %s2244_s9, %s2237_s8 }
  0x20   : > { %p2240_p9 = pnand %p2238_p7, %p2226_p0 }
  0x21   : > { %p2247_p8 = por %p2246_p6, %p2245_p3 }
  0x22   : > { %p2241_p10 = pneg %p2240_p9 }
  0x24   : > { %p2248_p12 = pnand %p2247_p8, %p2241_p10 }
  0x26   : > { %2251 = shalt.err (!%p2248_p12)
}
  0x27   : > { %2123 = dma.hbm_to_vmem [thread:$0]  (!%p2419_p11), %s2989_s2, 16, %s179_s24, [#allocation6]  }
  0x28   : > { %s36_s12 = sadd.s32 1, %s2332_s16  ;;  %s1798_s18 = sshll.u32 %s189_s25, 8 }
  0x29   : > { %p38_p13 = scmp.ge.s32.totalorder %s36_s12, 16  ;;  %s1913_s23 = sshll.u32 %s2332_s16, 12 }
  0x2a   : > { %s193_s28 = scalar_lea.vmem [#allocation3], %s1798_s18  ;;  %s2452_s4 = scalar_lea.hbm %s2987_s0, %s1913_s23 }
  0x2b   : > { %s201_s29 = sshll.u32 %s193_s28, 4  ;;  %s3014_s12 = smov (%p38_p13, %s36_s12), 0  ;;  %s2454_s29 = int_to_ptr.vmem [resolvable:$true] %s201_s29 }
  0x2c   : > { %s40_s24 = ssub.s32 %s2332_s16, %s3014_s12  ;;  %s2464_s6 = scalar_lea.sflag [#allocation4], %s189_s25 }
  0x2d   : > { %p2458_p3 = scmp.eq.s32.totalorder %s40_s24, 0  ;;  %s2252_s7 = scalar_lea.hbm %s2452_s4, 4096 }
  0x2e   : > { %p2253_p6 = scmp.ne.s32.totalorder %s2452_s4, %s2252_s7  ;;  %p3002_p8 = scmp.ne.s32.totalorder %s3000_s27, 0 }
  0x2f   : > { %s2257_s10 = scalar_lea.hbm %s2987_s0, 65536  ;;  %p2258_p1 = scmp.lt.u32.totalorder %s2452_s4, %s2987_s0 }
  0x30   : > { %p2254_p11 = pneg %p3002_p8  ;;  %p2259_p2 = scmp.lt.u32.totalorder %s2257_s10, %s2252_s7 }
  0x31   : > { %p2261_p4 = scmp.lt.u32.totalorder %s2252_s7, %s2452_s4 }
  0x32   : > { %p2255_p12 = pnand %p2254_p11, %p2253_p6  ;;  %p2260_p5 = por %p2259_p2, %p2258_p1 }
  0x34   : > { %p2256_p0 = pneg %p2255_p12  ;;  %p2262_p7 = por %p2261_p4, %p2260_p5 }
  0x36   : > { %p2263_p9 = pnand %p2262_p7, %p2256_p0 }
  0x38   : > { %2266 = shalt.err (!%p2263_p9)
}
  0x39   : > { %s2267_s25 = scalar_lea.vmem %s2454_s29, 4096  ;;  %s2339_s23 = smov [#allocation3]  }
  0x3a   : > { %p2268_p10 = scmp.ne.s32.totalorder %s2454_s29, %s2267_s25  ;;  %s2272_s28 = sshll.u32 %s2339_s23, 4  ;;  %s2273_s28 = int_to_ptr.vmem [resolvable:$false] %s2272_s28 }
  0x3b   : > { %s2274_s26 = scalar_lea.vmem %s2273_s28, 8192  ;;  %p2275_p12 = scmp.lt.s32.totalorder %s2454_s29, %s2273_s28 }
  0x3c   : > { %p2270_p13 = pnand %p2268_p10, %p2254_p11  ;;  %p2276_p1 = scmp.lt.s32.totalorder %s2274_s26, %s2267_s25 }
  0x3e   : > { %p2271_p6 = pneg %p2270_p13  ;;  %p2277_p2 = por %p2276_p1, %p2275_p12 }
  0x40   : > { %p2278_p5 = pnand %p2277_p2, %p2271_p6 }
  0x42   : > { %2281 = shalt.err (!%p2278_p5)
}
  0x43   : > { %s2340_s30 = smov 64   ;;  %s2341_s24 = smov 4  }
  0x44   : > { %2127 = dma.hbm_to_vmem [thread:$0]  (!%p3002_p8), %s2452_s4, 4096, %s2454_s29, %s2464_s6, %s2340_s30, %s2340_s30, %s2341_s24  }
  0x45   : > { %s2497_s7 = scalar_select %p2458_p3, %s2324_s14, %s45_s19  }
  0x46   : > { %p3003_p11 = scmp.ne.s32.totalorder %s2998_s22, 0 }
  0x47   : > { %s215_s8 = sand.u32 (!%p3003_p11), 1, %s2320_s13   ;;  %p3004_p0 = scmp.ne.s32.totalorder (!%p3003_p11), %s2997_s21, 0 }
  0x48   : > { %213 = sbr.rel (%p3003_p11) target bundleno = 415 (0x19f), region = 32  ;;  %s1802_s9 = sshll.u32 (!%p3003_p11), %s215_s8, 8 }
  0x49   : > { %s216_s10 = scalar_lea.sflag (!%p3003_p11), [#allocation4], %s215_s8  ;;  %s2502_s11 = scalar_lea.vmem (!%p3003_p11), [#allocation3], %s1802_s9 }
  0x4f   : > { %2307 = dma.done.wait (%p3004_p0), %s216_s10, 4096  }
  0x50   : > { %2309 = vsyncadd (%p3004_p0), %s216_s10, 4294963200  ;;  %p3005_p8 = scmp.ne.s32.totalorder %s2996_s20, 0 }
  0x52   : > { %2311 = dma.done.wait (%p3005_p8), [#allocation6], 16  }
  0x53   : > { %2313 = vsyncadd (%p3005_p8), [#allocation6], 4294967280  ;;  %vm281_vm0 = vcmask 523264   ;;  %v2342_v0 = vmov 0.0   ;;  %v2183_v1 = vld [vmem:[%s2988_s1] sm:$0xff]   ;;  %v2184_v2 = vld [vmem:[%s2988_s1 + $0x8] sm:$0xff]  }
  0x54   : > { %284 = vst.msk [vmem:[#allocation2 + $0x10] sm:$0xff] %vm281_vm0, %v2342_v0  ;;  %282 = vst.msk [vmem:[#allocation2] sm:$0xff] %vm281_vm0, %v2342_v0  ;;  %2018 = vmatprep.subr.bf16.mxu0 %v2183_v1  ;;  %2098 = vmatprep.subr.bf16.mxu1 %v2183_v1  ;;  %v2185_v3 = vld [vmem:[%s2988_s1 + $0x10] sm:$0xff]   ;;  %v2186_v4 = vld [vmem:[%s2988_s1 + $0x18] sm:$0xff]   ;;  %s1804_s8 = sshll.u32 %s2328_s15, 6  ;;  %vm1606_vm1 = vcmask 519168  }
  0x55   : > { %283 = vst.msk [vmem:[#allocation2 + $0x8] sm:$0xff] %vm281_vm0, %v2342_v0  ;;  %285 = vst.msk [vmem:[#allocation2 + $0x18] sm:$0xff] %vm281_vm0, %v2342_v0  ;;  %2019 = vmatpush3.bf16.msra.mxu0 %v2183_v1  ;;  %2106 = vmatpush3.bf16.msra.mxu1 %v2183_v1  ;;  %v2191_v5 = vld [vmem:[%s2502_s11] sm:$0xff]   ;;  %v2188_v8 = vld [vmem:[%s2988_s1 + $0x28] sm:$0xff]   ;;  %p2699_p3 = scmp.lt.s32.totalorder %s1804_s8, 1023 }
  0x56   : > { %286 = vst.msk [vmem:[#allocation2 + $0x20] sm:$0xff] %vm281_vm0, %v2342_v0  ;;  %287 = vst.msk [vmem:[#allocation2 + $0x28] sm:$0xff] %vm281_vm0, %v2342_v0  ;;  %2020 = vmatprep.subr.bf16.mxu0 %v2184_v2  ;;  %2099 = vmatprep.subr.bf16.mxu1 %v2184_v2  ;;  %v2192_v6 = vld [vmem:[%s2502_s11 + $0x80] sm:$0xff]   ;;  %v2189_v9 = vld [vmem:[%s2988_s1 + $0x30] sm:$0xff]  }
  0x57   : > { %288 = vst.msk [vmem:[#allocation2 + $0x30] sm:$0xff] %vm281_vm0, %v2342_v0  ;;  %289 = vst.msk [vmem:[#allocation2 + $0x38] sm:$0xff] %vm281_vm0, %v2342_v0  ;;  %2034 = vmatprep.mubr.bf16.mxu0 %v2191_v5  ;;  %v2187_v7 = vld [vmem:[%s2988_s1 + $0x20] sm:$0xff]   ;;  %2066 = vmatprep.mubr.bf16.mxu1 %v2192_v6  ;;  %v2190_v10 = vld [vmem:[%s2988_s1 + $0x38] sm:$0xff]   ;;  %s3016_s8 = smov (!%p2699_p3, %s1804_s8), 1023 }
  0x58   : > { %290 = vst.msk [vmem:[#allocation2 + $0x40] sm:$0xff] %vm281_vm0, %v2342_v0  ;;  %291 = vst.msk [vmem:[#allocation2 + $0x48] sm:$0xff] %vm281_vm0, %v2342_v0  ;;  %v2193_v11 = vld [vmem:[%s2502_s11 + $0x8] sm:$0xff]   ;;  %v2195_v13 = vld [vmem:[%s2502_s11 + $0x10] sm:$0xff]   ;;  %s1805_s15 = sshll.u32 %s3016_s8, 2 }
  0x59   : > { %292 = vst.msk [vmem:[#allocation2 + $0x50] sm:$0xff] %vm281_vm0, %v2342_v0  ;;  %293 = vst.msk [vmem:[#allocation2 + $0x58] sm:$0xff] %vm281_vm0, %v2342_v0  ;;  %2021 = vmatpush3.bf16.msra.mxu0 %v2184_v2  ;;  %2107 = vmatpush3.bf16.msra.mxu1 %v2184_v2  ;;  %v2194_v12 = vld [vmem:[%s2502_s11 + $0x88] sm:$0xff]   ;;  %v2196_v14 = vld [vmem:[%s2502_s11 + $0x90] sm:$0xff]   ;;  %s2735_s19 = scalar_lea.vmem %s2990_s3, %s1805_s15 }
  0x5a   : > { %294 = vst.msk [vmem:[#allocation2 + $0x60] sm:$0xff] %vm281_vm0, %v2342_v0  ;;  %295 = vst.msk [vmem:[#allocation2 + $0x68] sm:$0xff] %vm281_vm0, %v2342_v0  ;;  %2022 = vmatprep.subr.bf16.mxu0 %v2185_v3  ;;  %2100 = vmatprep.subr.bf16.mxu1 %v2185_v3  ;;  %v2197_v15 = vld [vmem:[%s2502_s11 + $0x18] sm:$0xff]   ;;  %v2199_v17 = vld [vmem:[%s2502_s11 + $0x20] sm:$0xff]  }
  0x5b   : > { %296 = vst.msk [vmem:[#allocation2 + $0x70] sm:$0xff] %vm281_vm0, %v2342_v0  ;;  %297 = vst.msk [vmem:[#allocation2 + $0x78] sm:$0xff] %vm281_vm0, %v2342_v0  ;;  %v2198_v16 = vld [vmem:[%s2502_s11 + $0x98] sm:$0xff]   ;;  %v2200_v18 = vld [vmem:[%s2502_s11 + $0xa0] sm:$0xff]  }
  0x5c   : > { %298 = vst.msk [vmem:[#allocation2 + $0x80] sm:$0xff] %vm281_vm0, %v2342_v0  ;;  %299 = vst.msk [vmem:[#allocation2 + $0x88] sm:$0xff] %vm281_vm0, %v2342_v0  ;;  %v2201_v19 = vld [vmem:[%s2502_s11 + $0x28] sm:$0xff]   ;;  %v2203_v21 = vld [vmem:[%s2502_s11 + $0x30] sm:$0xff]  }
  0x5d   : > { %300 = vst.msk [vmem:[#allocation2 + $0x90] sm:$0xff] %vm281_vm0, %v2342_v0  ;;  %301 = vst.msk [vmem:[#allocation2 + $0x98] sm:$0xff] %vm281_vm0, %v2342_v0  ;;  %2023 = vmatpush3.bf16.msra.mxu0 %v2185_v3  ;;  %2108 = vmatpush3.bf16.msra.mxu1 %v2185_v3  ;;  %v2202_v20 = vld [vmem:[%s2502_s11 + $0xa8] sm:$0xff]   ;;  %v2204_v22 = vld [vmem:[%s2502_s11 + $0xb0] sm:$0xff]  }
  0x5e   : > { %302 = vst.msk [vmem:[#allocation2 + $0xa0] sm:$0xff] %vm281_vm0, %v2342_v0  ;;  %303 = vst.msk [vmem:[#allocation2 + $0xa8] sm:$0xff] %vm281_vm0, %v2342_v0  ;;  %2024 = vmatprep.subr.bf16.mxu0 %v2186_v4  ;;  %2101 = vmatprep.subr.bf16.mxu1 %v2186_v4  ;;  %v2205_v23 = vld [vmem:[%s2502_s11 + $0x38] sm:$0xff]   ;;  %v2207_v25 = vld [vmem:[%s2502_s11 + $0x40] sm:$0xff]  }
  0x5f   : > { %304 = vst.msk [vmem:[#allocation2 + $0xb0] sm:$0xff] %vm281_vm0, %v2342_v0  ;;  %305 = vst.msk [vmem:[#allocation2 + $0xb8] sm:$0xff] %vm281_vm0, %v2342_v0  ;;  %v2206_v24 = vld [vmem:[%s2502_s11 + $0xb8] sm:$0xff]   ;;  %v2208_v26 = vld [vmem:[%s2502_s11 + $0xc0] sm:$0xff]  }
  0x60   : > { %306 = vst.msk [vmem:[#allocation2 + $0xc0] sm:$0xff] %vm281_vm0, %v2342_v0  ;;  %307 = vst.msk [vmem:[#allocation2 + $0xc8] sm:$0xff] %vm281_vm0, %v2342_v0  ;;  %v2209_v27 = vld [vmem:[%s2502_s11 + $0x48] sm:$0xff]   ;;  %v2211_v29 = vld [vmem:[%s2502_s11 + $0x50] sm:$0xff]  }
  0x61   : > { %308 = vst.msk [vmem:[#allocation2 + $0xd0] sm:$0xff] %vm281_vm0, %v2342_v0  ;;  %309 = vst.msk [vmem:[#allocation2 + $0xd8] sm:$0xff] %vm281_vm0, %v2342_v0  ;;  %2025 = vmatpush3.bf16.msra.mxu0 %v2186_v4  ;;  %2109 = vmatpush3.bf16.msra.mxu1 %v2186_v4  ;;  %v2210_v28 = vld [vmem:[%s2502_s11 + $0xc8] sm:$0xff]   ;;  %v2212_v30 = vld [vmem:[%s2502_s11 + $0xd0] sm:$0xff]  }
  0x62   : > { %310 = vst.msk [vmem:[#allocation2 + $0xe0] sm:$0xff] %vm281_vm0, %v2342_v0  ;;  %311 = vst.msk [vmem:[#allocation2 + $0xe8] sm:$0xff] %vm281_vm0, %v2342_v0  ;;  %2026 = vmatprep.subr.bf16.mxu0 %v2187_v7  ;;  %2102 = vmatprep.subr.bf16.mxu1 %v2187_v7  ;;  %v2213_v31 = vld [vmem:[%s2502_s11 + $0x58] sm:$0xff]   ;;  %v2215_v33 = vld [vmem:[%s2502_s11 + $0x60] sm:$0xff]  }
  0x63   : > { %312 = vst.msk [vmem:[#allocation2 + $0xf0] sm:$0xff] %vm281_vm0, %v2342_v0  ;;  %313 = vst.msk [vmem:[#allocation2 + $0xf8] sm:$0xff] %vm281_vm0, %v2342_v0  ;;  %v2214_v32 = vld [vmem:[%s2502_s11 + $0xd8] sm:$0xff]   ;;  %v2216_v34 = vld [vmem:[%s2502_s11 + $0xe0] sm:$0xff]  }
  0x64   : > { %314 = vst.msk [vmem:[#allocation2 + $0x100] sm:$0xff] %vm281_vm0, %v2342_v0  ;;  %315 = vst.msk [vmem:[#allocation2 + $0x108] sm:$0xff] %vm281_vm0, %v2342_v0  ;;  %v2217_v35 = vld [vmem:[%s2502_s11 + $0x68] sm:$0xff]   ;;  %v2219_v37 = vld [vmem:[%s2502_s11 + $0x70] sm:$0xff]  }
  0x65   : > { %316 = vst.msk [vmem:[#allocation2 + $0x110] sm:$0xff] %vm281_vm0, %v2342_v0  ;;  %317 = vst.msk [vmem:[#allocation2 + $0x118] sm:$0xff] %vm281_vm0, %v2342_v0  ;;  %2027 = vmatpush3.bf16.msra.mxu0 %v2187_v7  ;;  %2110 = vmatpush3.bf16.msra.mxu1 %v2187_v7  ;;  %v2218_v36 = vld [vmem:[%s2502_s11 + $0xe8] sm:$0xff]   ;;  %v2220_v38 = vld [vmem:[%s2502_s11 + $0xf0] sm:$0xff]  }
  0x66   : > { %318 = vst.msk [vmem:[#allocation2 + $0x120] sm:$0xff] %vm281_vm0, %v2342_v0  ;;  %319 = vst.msk [vmem:[#allocation2 + $0x128] sm:$0xff] %vm281_vm0, %v2342_v0  ;;  %2028 = vmatprep.subr.bf16.mxu0 %v2188_v8  ;;  %2103 = vmatprep.subr.bf16.mxu1 %v2188_v8  ;;  %v2221_v39 = vld [vmem:[%s2502_s11 + $0x78] sm:$0xff]   ;;  %v348_v41 = vld [vmem:[#allocation2 + $0x10] sm:$0xff] }
  0x67   : > { %320 = vst.msk [vmem:[#allocation2 + $0x130] sm:$0xff] %vm281_vm0, %v2342_v0  ;;  %321 = vst.msk [vmem:[#allocation2 + $0x138] sm:$0xff] %vm281_vm0, %v2342_v0  ;;  %v2222_v40 = vld [vmem:[%s2502_s11 + $0xf8] sm:$0xff]   ;;  %v346_v43 = vld [vmem:[#allocation2] sm:$0xff] }
  0x68   : > { %322 = vst.msk [vmem:[#allocation2 + $0x140] sm:$0xff] %vm281_vm0, %v2342_v0  ;;  %323 = vst.msk [vmem:[#allocation2 + $0x148] sm:$0xff] %vm281_vm0, %v2342_v0  ;;  %v349_v47 = vld [vmem:[#allocation2 + $0x18] sm:$0xff]  ;;  %v347_v53 = vld [vmem:[#allocation2 + $0x8] sm:$0xff] }
  0x69   : > { %324 = vst.msk [vmem:[#allocation2 + $0x150] sm:$0xff] %vm281_vm0, %v2342_v0  ;;  %325 = vst.msk [vmem:[#allocation2 + $0x158] sm:$0xff] %vm281_vm0, %v2342_v0  ;;  %2029 = vmatpush3.bf16.msra.mxu0 %v2188_v8  ;;  %2111 = vmatpush3.bf16.msra.mxu1 %v2188_v8  ;;  %v352_v1 = vld [vmem:[#allocation2 + $0x30] sm:$0xff]  ;;  %v350_v3 = vld [vmem:[#allocation2 + $0x20] sm:$0xff] }
  0x6a   : > { %326 = vst.msk [vmem:[#allocation2 + $0x160] sm:$0xff] %vm281_vm0, %v2342_v0  ;;  %327 = vst.msk [vmem:[#allocation2 + $0x168] sm:$0xff] %vm281_vm0, %v2342_v0  ;;  %2030 = vmatprep.subr.bf16.mxu0 %v2189_v9  ;;  %2104 = vmatprep.subr.bf16.mxu1 %v2189_v9  ;;  %v2717_v5 = vld [vmem:[#allocation5] ss:$0 sm:$0xff]  ;;  %v353_v8 = vld [vmem:[#allocation2 + $0x38] sm:$0xff] }
  0x6b   : > { %328 = vst.msk [vmem:[#allocation2 + $0x170] sm:$0xff] %vm281_vm0, %v2342_v0  ;;  %329 = vst.msk [vmem:[#allocation2 + $0x178] sm:$0xff] %vm281_vm0, %v2342_v0  ;;  %v378_v44 = vld [vmem:[#allocation2 + $0x100] sm:$0xff]  ;;  %v379_v54 = vld [vmem:[#allocation2 + $0x108] sm:$0xff] }
  0x6c   : > { %330 = vst.msk [vmem:[#allocation2 + $0x180] sm:$0xff] %vm281_vm0, %v2342_v0  ;;  %331 = vst.msk [vmem:[#allocation2 + $0x188] sm:$0xff] %vm281_vm0, %v2342_v0  ;;  %v380_v42 = vld [vmem:[#allocation2 + $0x110] sm:$0xff]  ;;  %v381_v48 = vld [vmem:[#allocation2 + $0x118] sm:$0xff] }
  0x6d   : > { %332 = vst.msk [vmem:[#allocation2 + $0x190] sm:$0xff] %vm281_vm0, %v2342_v0  ;;  %333 = vst.msk [vmem:[#allocation2 + $0x198] sm:$0xff] %vm281_vm0, %v2342_v0  ;;  %2031 = vmatpush3.bf16.msra.mxu0 %v2189_v9  ;;  %2112 = vmatpush3.bf16.msra.mxu1 %v2189_v9  ;;  %v382_v4 = vld [vmem:[#allocation2 + $0x120] sm:$0xff] }
  0x6e   : > { %334 = vst.msk [vmem:[#allocation2 + $0x1a0] sm:$0xff] %vm281_vm0, %v2342_v0  ;;  %335 = vst.msk [vmem:[#allocation2 + $0x1a8] sm:$0xff] %vm281_vm0, %v2342_v0  ;;  %2032 = vmatprep.subr.bf16.mxu0 %v2190_v10  ;;  %2105 = vmatprep.subr.bf16.mxu1 %v2190_v10  ;;  %v384_v2 = vld [vmem:[#allocation2 + $0x130] sm:$0xff]  ;;  %v385_v9 = vld [vmem:[#allocation2 + $0x138] sm:$0xff] }
  0x6f   : > { %336 = vst.msk [vmem:[#allocation2 + $0x1b0] sm:$0xff] %vm281_vm0, %v2342_v0  ;;  %337 = vst.msk [vmem:[#allocation2 + $0x1b8] sm:$0xff] %vm281_vm0, %v2342_v0 }
  0x70   : > { %338 = vst.msk [vmem:[#allocation2 + $0x1c0] sm:$0xff] %vm281_vm0, %v2342_v0  ;;  %339 = vst.msk [vmem:[#allocation2 + $0x1c8] sm:$0xff] %vm281_vm0, %v2342_v0 }
  0x71   : > { %340 = vst.msk [vmem:[#allocation2 + $0x1d0] sm:$0xff] %vm281_vm0, %v2342_v0  ;;  %341 = vst.msk [vmem:[#allocation2 + $0x1d8] sm:$0xff] %vm281_vm0, %v2342_v0  ;;  %2033 = vmatpush3.bf16.msra.mxu0 %v2190_v10  ;;  %2113 = vmatpush3.bf16.msra.mxu1 %v2190_v10 }
  0x72   : > { %342 = vst.msk [vmem:[#allocation2 + $0x1e0] sm:$0xff] %vm281_vm0, %v2342_v0  ;;  %343 = vst.msk [vmem:[#allocation2 + $0x1e8] sm:$0xff] %vm281_vm0, %v2342_v0 }
  0x73   : > { %344 = vst.msk [vmem:[#allocation2 + $0x1f0] sm:$0xff] %vm281_vm0, %v2342_v0  ;;  %345 = vst.msk [vmem:[#allocation2 + $0x1f8] sm:$0xff] %vm281_vm0, %v2342_v0 }
  0x74   : > { %2035 = vmatmul.mubr.bf16.vlgmr.msra.gmra.mrb[0].mxu0 %v2193_v11  ;;  %2067 = vmatmul.mubr.bf16.vlgmr.msra.gmra.mrb[0].mxu1 %v2194_v12 }
  0x75   : > { %2038 = vmatprep.mubr.bf16.mxu0 %v2195_v13  ;;  %2070 = vmatprep.mubr.bf16.mxu1 %v2196_v14  ;;  %v351_v14 = vld [vmem:[#allocation2 + $0x28] sm:$0xff] }
  0x7c   : > { %2039 = vmatmul.mubr.bf16.gmra.mrb[4].mxu0 %v2197_v15  ;;  %2071 = vmatmul.mubr.bf16.gmra.mrb[4].mxu1 %v2198_v16  ;;  %v383_v15 = vld [vmem:[#allocation2 + $0x128] sm:$0xff] }
  0x7d   : > { %2042 = vmatprep.mubr.bf16.mxu0 %v2199_v17  ;;  %2074 = vmatprep.mubr.bf16.mxu1 %v2200_v18 }
  0x84   : > { %2043 = vmatmul.mubr.bf16.gmra.mrb[8].mxu0 %v2201_v19  ;;  %2075 = vmatmul.mubr.bf16.gmra.mrb[8].mxu1 %v2202_v20 }
  0x85   : > { %2046 = vmatprep.mubr.bf16.mxu0 %v2203_v21  ;;  %2078 = vmatprep.mubr.bf16.mxu1 %v2204_v22 }
  0x8c   : > { %2047 = vmatmul.mubr.bf16.gmra.mrb[12].mxu0 %v2205_v23  ;;  %2079 = vmatmul.mubr.bf16.gmra.mrb[12].mxu1 %v2206_v24 }
  0x8d   : > { %2050 = vmatprep.mubr.bf16.mxu0 %v2207_v25  ;;  %2082 = vmatprep.mubr.bf16.mxu1 %v2208_v26 }
  0x94   : > { %2051 = vmatmul.mubr.bf16.gmra.mrb[16].mxu0 %v2209_v27  ;;  %2083 = vmatmul.mubr.bf16.gmra.mrb[16].mxu1 %v2210_v28 }
  0x95   : > { %2054 = vmatprep.mubr.bf16.mxu0 %v2211_v29  ;;  %2086 = vmatprep.mubr.bf16.mxu1 %v2212_v30 }
  0x9c   : > { %2055 = vmatmul.mubr.bf16.gmra.mrb[20].mxu0 %v2213_v31  ;;  %2087 = vmatmul.mubr.bf16.gmra.mrb[20].mxu1 %v2214_v32 }
  0x9d   : > { %2058 = vmatprep.mubr.bf16.mxu0 %v2215_v33  ;;  %2090 = vmatprep.mubr.bf16.mxu1 %v2216_v34 }
  0xa4   : > { %2059 = vmatmul.mubr.bf16.gmra.mrb[24].mxu0 %v2217_v35  ;;  %2091 = vmatmul.mubr.bf16.gmra.mrb[24].mxu1 %v2218_v36 }
  0xa5   : > { %2062 = vmatprep.mubr.bf16.mxu0 %v2219_v37  ;;  %2094 = vmatprep.mubr.bf16.mxu1 %v2220_v38 }
  0xac   : > { %2063 = vmatmul.mubr.bf16.gmra.mrb[28].mxu0 %v2221_v39  ;;  %2095 = vmatmul.mubr.bf16.gmra.mrb[28].mxu1 %v2222_v40 }
 0x147   : > { %v2036_v45 = vpop.f32.mrb[0].mxu0  ;;  %v2068_v46 = vpop.f32.mrb[0].mxu1 }
 0x148   : > { %v1021_v49 = vadd.f32 %v2036_v45, %v348_v41  ;;  %v1053_v50 = vadd.f32 %v2068_v46, %v380_v42  ;;  %v764_v51 = vpop.f32.mrb[1].mxu0  ;;  %v892_v52 = vpop.f32.mrb[1].mxu1  ;;  %v356_v46 = vld [vmem:[#allocation2 + $0x50] sm:$0xff] }
 0x149   : > { %v1019_v55 = vadd.f32 %v764_v51, %v346_v43  ;;  %v1051_v56 = vadd.f32 %v892_v52, %v378_v44  ;;  %v2037_v57 = vpop.f32.mrb[2].mxu0  ;;  %v2069_v58 = vpop.f32.mrb[2].mxu1  ;;  %v354_v52 = vld [vmem:[#allocation2 + $0x40] sm:$0xff] }
 0x14a   : > { %1086 = vst.msk [vmem:[#allocation2 + $0x10] sm:$0xff] %vm281_vm0, %v1021_v49  ;;  %1118 = vst.msk [vmem:[#allocation2 + $0x110] sm:$0xff] %vm281_vm0, %v1053_v50  ;;  %v1022_v59 = vadd.f32 %v2037_v57, %v349_v47  ;;  %v1054_v60 = vadd.f32 %v2069_v58, %v381_v48  ;;  %v767_v61 = vpop.f32.mrb[3].mxu0  ;;  %v895_v62 = vpop.f32.mrb[3].mxu1  ;;  %v388_v47 = vld [vmem:[#allocation2 + $0x150] sm:$0xff] }
 0x14b   : > { %1084 = vst.msk [vmem:[#allocation2] sm:$0xff] %vm281_vm0, %v1019_v55  ;;  %1116 = vst.msk [vmem:[#allocation2 + $0x100] sm:$0xff] %vm281_vm0, %v1051_v56  ;;  %v1020_v63 = vadd.f32 %v767_v61, %v347_v53  ;;  %v1052_v0 = vadd.f32 %v895_v62, %v379_v54  ;;  %v386_v53 = vld [vmem:[#allocation2 + $0x140] sm:$0xff]  ;;  %v389_v61 = vld [vmem:[#allocation2 + $0x158] sm:$0xff] }
 0x14c   : > { %1087 = vst.msk [vmem:[#allocation2 + $0x18] sm:$0xff] %vm281_vm0, %v1022_v59  ;;  %1119 = vst.msk [vmem:[#allocation2 + $0x118] sm:$0xff] %vm281_vm0, %v1054_v60  ;;  %v357_v60 = vld [vmem:[#allocation2 + $0x58] sm:$0xff] }
 0x14d   : > { %1085 = vst.msk [vmem:[#allocation2 + $0x8] sm:$0xff] %vm281_vm0, %v1020_v63  ;;  %1117 = vst.msk [vmem:[#allocation2 + $0x108] sm:$0xff] %vm281_vm0, %v1052_v0 }
 0x14f   : > { %v2040_v6 = vpop.f32.mrb[4].mxu0  ;;  %v2072_v7 = vpop.f32.mrb[4].mxu1 }
 0x150   : > { %v1025_v10 = vadd.f32 %v2040_v6, %v352_v1  ;;  %v1057_v11 = vadd.f32 %v2072_v7, %v384_v2  ;;  %v780_v12 = vpop.f32.mrb[5].mxu0  ;;  %v908_v13 = vpop.f32.mrb[5].mxu1  ;;  %v387_v6 = vld [vmem:[#allocation2 + $0x148] sm:$0xff] }
 0x151   : > { %v1153_v16 = vld [vmem:[#allocation2 + $0x10] sm:$0xff]  ;;  %v1023_v18 = vadd.f32 %v780_v12, %v350_v3  ;;  %v1055_v19 = vadd.f32 %v908_v13, %v382_v4  ;;  %v2041_v20 = vpop.f32.mrb[6].mxu0  ;;  %v2073_v21 = vpop.f32.mrb[6].mxu1  ;;  %v355_v4 = vld [vmem:[#allocation2 + $0x48] sm:$0xff] }
 0x152   : > { %v1185_v17 = vld [vmem:[#allocation2 + $0x110] sm:$0xff]  ;;  %v1224_v22 = vadd.f32 %v2717_v5, %v1153_v16  ;;  %v1151_v24 = vld [vmem:[#allocation2] sm:$0xff]  ;;  %1090 = vst.msk [vmem:[#allocation2 + $0x30] sm:$0xff] %vm281_vm0, %v1025_v10  ;;  %1122 = vst.msk [vmem:[#allocation2 + $0x130] sm:$0xff] %vm281_vm0, %v1057_v11  ;;  %v1026_v26 = vadd.f32 %v2041_v20, %v353_v8  ;;  %v1058_v27 = vadd.f32 %v2073_v21, %v385_v9  ;;  %v783_v28 = vpop.f32.mrb[7].mxu0  ;;  %v911_v29 = vpop.f32.mrb[7].mxu1 }
 0x153   : > { %v1256_v23 = vadd.f32 %v2717_v5, %v1185_v17  ;;  %v1183_v25 = vld [vmem:[#allocation2 + $0x100] sm:$0xff]  ;;  %v1222_v30 = vadd.f32 %v2717_v5, %v1151_v24  ;;  %v1154_v32 = vld [vmem:[#allocation2 + $0x18] sm:$0xff]  ;;  %1088 = vst.msk [vmem:[#allocation2 + $0x20] sm:$0xff] %vm281_vm0, %v1023_v18  ;;  %1120 = vst.msk [vmem:[#allocation2 + $0x120] sm:$0xff] %vm281_vm0, %v1055_v19  ;;  %v1024_v34 = vadd.f32 %v783_v28, %v351_v14 }
 0x154   : > { %v1254_v31 = vadd.f32 %v2717_v5, %v1183_v25  ;;  %v1186_v33 = vld [vmem:[#allocation2 + $0x118] sm:$0xff]  ;;  %v1056_v35 = vadd.f32 %v911_v29, %v383_v15  ;;  %v1288_v36 = vmax.f32 %v1224_v22, 0.0  ;;  %v1225_v38 = vadd.f32 %v2717_v5, %v1154_v32  ;;  %v1152_v40 = vld [vmem:[#allocation2 + $0x8] sm:$0xff]  ;;  %1091 = vst.msk [vmem:[#allocation2 + $0x38] sm:$0xff] %vm281_vm0, %v1026_v26  ;;  %1123 = vst.msk [vmem:[#allocation2 + $0x138] sm:$0xff] %vm281_vm0, %v1058_v27 }
 0x155   : > { %v1320_v37 = vmax.f32 %v1256_v23, 0.0  ;;  %v1257_v39 = vadd.f32 %v2717_v5, %v1186_v33  ;;  %v1184_v41 = vld [vmem:[#allocation2 + $0x108] sm:$0xff]  ;;  %v1286_v42 = vmax.f32 %v1222_v30, 0.0  ;;  %v1223_v44 = vadd.f32 %v2717_v5, %v1152_v40  ;;  %1089 = vst.msk [vmem:[#allocation2 + $0x28] sm:$0xff] %vm281_vm0, %v1024_v34  ;;  %v392_v40 = vld [vmem:[#allocation2 + $0x170] sm:$0xff] }
 0x156   : > { %v1318_v43 = vmax.f32 %v1254_v31, 0.0  ;;  %v1255_v45 = vadd.f32 %v2717_v5, %v1184_v41  ;;  %1121 = vst.msk [vmem:[#allocation2 + $0x128] sm:$0xff] %vm281_vm0, %v1056_v35  ;;  %v1916_v48 = vpack.c.bf16 %v1288_v36, %v1288_v36  ;;  %v1289_v50 = vmax.f32 %v1225_v38, 0.0 }
 0x157   : > { %v1948_v49 = vpack.c.bf16 %v1320_v37, %v1320_v37  ;;  %v1321_v51 = vmax.f32 %v1257_v39, 0.0  ;;  %v1914_v54 = vpack.c.bf16 %v1286_v42, %v1286_v42  ;;  %v1287_v56 = vmax.f32 %v1223_v44, 0.0  ;;  %v2044_v58 = vpop.f32.mrb[8].mxu0  ;;  %v2076_v59 = vpop.f32.mrb[8].mxu1  ;;  %v360_v39 = vld [vmem:[#allocation2 + $0x70] sm:$0xff] }
 0x158   : > { %v1946_v55 = vpack.c.bf16 %v1318_v43, %v1318_v43  ;;  %v1319_v57 = vmax.f32 %v1255_v45, 0.0  ;;  %1609 = vst.msk [vmem:[%s2735_s19 + $0x8] sm:$0xf] %vm1606_vm1, %v1916_v48  ;;  %v1917_v62 = vpack.c.bf16 %v1289_v50, %v1289_v50  ;;  %v1029_v0 = vadd.f32 %v2044_v58, %v356_v46  ;;  %v796_v2 = vpop.f32.mrb[9].mxu0  ;;  %v924_v3 = vpop.f32.mrb[9].mxu1  ;;  %v358_v45 = vld [vmem:[#allocation2 + $0x60] sm:$0xff] }
 0x159   : > { %1641 = vst.msk [vmem:[%s2735_s19 + $0x88] sm:$0xf] %vm1606_vm1, %v1948_v49  ;;  %v1949_v63 = vpack.c.bf16 %v1321_v51, %v1321_v51  ;;  %v1061_v1 = vadd.f32 %v2076_v59, %v388_v47  ;;  %1607 = vst.msk [vmem:[%s2735_s19] sm:$0xf] %vm1606_vm1, %v1914_v54  ;;  %v1915_v7 = vpack.c.bf16 %v1287_v56, %v1287_v56  ;;  %v1157_v9 = vld [vmem:[#allocation2 + $0x30] sm:$0xff]  ;;  %v2045_v13 = vpop.f32.mrb[10].mxu0 }
 0x15a   : > { %1639 = vst.msk [vmem:[%s2735_s19 + $0x80] sm:$0xf] %vm1606_vm1, %v1946_v55  ;;  %v1947_v8 = vpack.c.bf16 %v1319_v57, %v1319_v57  ;;  %v1189_v10 = vld [vmem:[#allocation2 + $0x130] sm:$0xff]  ;;  %v1027_v11 = vadd.f32 %v796_v2, %v354_v52  ;;  %v1059_v12 = vadd.f32 %v924_v3, %v386_v53  ;;  %v2077_v14 = vpop.f32.mrb[10].mxu1  ;;  %1610 = vst.msk [vmem:[%s2735_s19 + $0xc] sm:$0xf] %vm1606_vm1, %v1917_v62 }
 0x15b   : > { %1642 = vst.msk [vmem:[%s2735_s19 + $0x8c] sm:$0xf] %vm1606_vm1, %v1949_v63  ;;  %v1228_v15 = vadd.f32 %v2717_v5, %v1157_v9  ;;  %v1260_v16 = vadd.f32 %v2717_v5, %v1189_v10  ;;  %v1155_v17 = vld [vmem:[#allocation2 + $0x20] sm:$0xff]  ;;  %v1030_v19 = vadd.f32 %v2045_v13, %v357_v60  ;;  %v1062_v20 = vadd.f32 %v2077_v14, %v389_v61  ;;  %v799_v21 = vpop.f32.mrb[11].mxu0  ;;  %v927_v22 = vpop.f32.mrb[11].mxu1  ;;  %v1158_v25 = vld [vmem:[#allocation2 + $0x38] sm:$0xff] }
 0x15c   : > { %v1187_v18 = vld [vmem:[#allocation2 + $0x120] sm:$0xff]  ;;  %1094 = vst.msk [vmem:[#allocation2 + $0x50] sm:$0xff] %vm281_vm0, %v1029_v0  ;;  %1126 = vst.msk [vmem:[#allocation2 + $0x150] sm:$0xff] %vm281_vm0, %v1061_v1  ;;  %v1226_v23 = vadd.f32 %v2717_v5, %v1155_v17  ;;  %v1190_v26 = vld [vmem:[#allocation2 + $0x138] sm:$0xff]  ;;  %v1028_v27 = vadd.f32 %v799_v21, %v355_v4  ;;  %v1060_v28 = vadd.f32 %v927_v22, %v387_v6 }
 0x15d   : > { %1608 = vst.msk [vmem:[%s2735_s19 + $0x4] sm:$0xf] %vm1606_vm1, %v1915_v7  ;;  %1640 = vst.msk [vmem:[%s2735_s19 + $0x84] sm:$0xf] %vm1606_vm1, %v1947_v8  ;;  %v1258_v24 = vadd.f32 %v2717_v5, %v1187_v18  ;;  %v1292_v29 = vmax.f32 %v1228_v15, 0.0  ;;  %v1324_v30 = vmax.f32 %v1260_v16, 0.0  ;;  %v1229_v31 = vadd.f32 %v2717_v5, %v1158_v25 }
 0x15e   : > { %1092 = vst.msk [vmem:[#allocation2 + $0x40] sm:$0xff] %vm281_vm0, %v1027_v11  ;;  %1124 = vst.msk [vmem:[#allocation2 + $0x140] sm:$0xff] %vm281_vm0, %v1059_v12  ;;  %v1261_v32 = vadd.f32 %v2717_v5, %v1190_v26  ;;  %v1156_v33 = vld [vmem:[#allocation2 + $0x28] sm:$0xff]  ;;  %v1290_v35 = vmax.f32 %v1226_v23, 0.0  ;;  %v390_v46 = vld [vmem:[#allocation2 + $0x160] sm:$0xff] }
 0x15f   : > { %v1188_v34 = vld [vmem:[#allocation2 + $0x128] sm:$0xff]  ;;  %1095 = vst.msk [vmem:[#allocation2 + $0x58] sm:$0xff] %vm281_vm0, %v1030_v19  ;;  %1127 = vst.msk [vmem:[#allocation2 + $0x158] sm:$0xff] %vm281_vm0, %v1062_v20  ;;  %v1322_v36 = vmax.f32 %v1258_v24, 0.0  ;;  %v1227_v37 = vadd.f32 %v2717_v5, %v1156_v33  ;;  %v1920_v41 = vpack.c.bf16 %v1292_v29, %v1292_v29  ;;  %v1952_v42 = vpack.c.bf16 %v1324_v30, %v1324_v30  ;;  %v2048_v51 = vpop.f32.mrb[12].mxu0  ;;  %v2080_v52 = vpop.f32.mrb[12].mxu1 }
 0x160   : > { %v1259_v38 = vadd.f32 %v2717_v5, %v1188_v34  ;;  %1093 = vst.msk [vmem:[#allocation2 + $0x48] sm:$0xff] %vm281_vm0, %v1028_v27  ;;  %1125 = vst.msk [vmem:[#allocation2 + $0x148] sm:$0xff] %vm281_vm0, %v1060_v28  ;;  %v1293_v43 = vmax.f32 %v1229_v31, 0.0  ;;  %v1325_v44 = vmax.f32 %v1261_v32, 0.0  ;;  %v1918_v47 = vpack.c.bf16 %v1290_v35, %v1290_v35  ;;  %v361_v53 = vld [vmem:[#allocation2 + $0x78] sm:$0xff]  ;;  %v812_v59 = vpop.f32.mrb[13].mxu0 }
 0x161   : > { %v1950_v48 = vpack.c.bf16 %v1322_v36, %v1322_v36  ;;  %v1291_v49 = vmax.f32 %v1227_v37, 0.0  ;;  %v393_v54 = vld [vmem:[#allocation2 + $0x178] sm:$0xff]  ;;  %1613 = vst.msk [vmem:[%s2735_s19 + $0x18] sm:$0xf] %vm1606_vm1, %v1920_v41  ;;  %1645 = vst.msk [vmem:[%s2735_s19 + $0x98] sm:$0xf] %vm1606_vm1, %v1952_v42  ;;  %v1033_v57 = vadd.f32 %v2048_v51, %v360_v39  ;;  %v1065_v58 = vadd.f32 %v2080_v52, %v392_v40 }
 0x162   : > { %v1323_v50 = vmax.f32 %v1259_v38, 0.0  ;;  %v1921_v55 = vpack.c.bf16 %v1293_v43, %v1293_v43  ;;  %v1953_v56 = vpack.c.bf16 %v1325_v44, %v1325_v44  ;;  %v940_v60 = vpop.f32.mrb[13].mxu1  ;;  %v359_v61 = vld [vmem:[#allocation2 + $0x68] sm:$0xff]  ;;  %1611 = vst.msk [vmem:[%s2735_s19 + $0x10] sm:$0xf] %vm1606_vm1, %v1918_v47  ;;  %v1031_v3 = vadd.f32 %v812_v59, %v358_v45  ;;  %v2049_v6 = vpop.f32.mrb[14].mxu0 }
 0x163   : > { %v391_v62 = vld [vmem:[#allocation2 + $0x168] sm:$0xff]  ;;  %1643 = vst.msk [vmem:[%s2735_s19 + $0x90] sm:$0xf] %vm1606_vm1, %v1950_v48  ;;  %v1919_v63 = vpack.c.bf16 %v1291_v49, %v1291_v49  ;;  %v1161_v1 = vld [vmem:[#allocation2 + $0x50] sm:$0xff]  ;;  %v1063_v4 = vadd.f32 %v940_v60, %v390_v46  ;;  %v2081_v7 = vpop.f32.mrb[14].mxu1  ;;  %v1034_v12 = vadd.f32 %v2049_v6, %v361_v53  ;;  %v815_v14 = vpop.f32.mrb[15].mxu0 }
 0x164   : > { %v1951_v0 = vpack.c.bf16 %v1323_v50, %v1323_v50  ;;  %v1193_v2 = vld [vmem:[#allocation2 + $0x150] sm:$0xff]  ;;  %1614 = vst.msk [vmem:[%s2735_s19 + $0x1c] sm:$0xf] %vm1606_vm1, %v1921_v55  ;;  %1646 = vst.msk [vmem:[%s2735_s19 + $0x9c] sm:$0xf] %vm1606_vm1, %v1953_v56  ;;  %v1232_v8 = vadd.f32 %v2717_v5, %v1161_v1  ;;  %v1066_v13 = vadd.f32 %v2081_v7, %v393_v54  ;;  %v943_v15 = vpop.f32.mrb[15].mxu1 }
 0x165   : > { %v1264_v9 = vadd.f32 %v2717_v5, %v1193_v2  ;;  %v1159_v10 = vld [vmem:[#allocation2 + $0x40] sm:$0xff]  ;;  %1098 = vst.msk [vmem:[#allocation2 + $0x70] sm:$0xff] %vm281_vm0, %v1033_v57  ;;  %1130 = vst.msk [vmem:[#allocation2 + $0x170] sm:$0xff] %vm281_vm0, %v1065_v58  ;;  %v1032_v20 = vadd.f32 %v815_v14, %v359_v61  ;;  %v1064_v21 = vadd.f32 %v943_v15, %v391_v62  ;;  %v364_v32 = vld [vmem:[#allocation2 + $0x90] sm:$0xff] }
 0x166   : > { %v1191_v11 = vld [vmem:[#allocation2 + $0x140] sm:$0xff]  ;;  %1612 = vst.msk [vmem:[%s2735_s19 + $0x14] sm:$0xf] %vm1606_vm1, %v1919_v63  ;;  %1644 = vst.msk [vmem:[%s2735_s19 + $0x94] sm:$0xf] %vm1606_vm1, %v1951_v0  ;;  %v1230_v16 = vadd.f32 %v2717_v5, %v1159_v10  ;;  %v1162_v18 = vld [vmem:[#allocation2 + $0x58] sm:$0xff] }
 0x167   : > { %v1262_v17 = vadd.f32 %v2717_v5, %v1191_v11  ;;  %v1194_v19 = vld [vmem:[#allocation2 + $0x158] sm:$0xff]  ;;  %1096 = vst.msk [vmem:[#allocation2 + $0x60] sm:$0xff] %vm281_vm0, %v1031_v3  ;;  %1128 = vst.msk [vmem:[#allocation2 + $0x160] sm:$0xff] %vm281_vm0, %v1063_v4  ;;  %v1296_v22 = vmax.f32 %v1232_v8, 0.0  ;;  %v1328_v23 = vmax.f32 %v1264_v9, 0.0  ;;  %v1233_v24 = vadd.f32 %v2717_v5, %v1162_v18  ;;  %v1160_v26 = vld [vmem:[#allocation2 + $0x48] sm:$0xff] }
 0x168   : > { %v1265_v25 = vadd.f32 %v2717_v5, %v1194_v19  ;;  %v1192_v27 = vld [vmem:[#allocation2 + $0x148] sm:$0xff]  ;;  %1099 = vst.msk [vmem:[#allocation2 + $0x78] sm:$0xff] %vm281_vm0, %v1034_v12  ;;  %1131 = vst.msk [vmem:[#allocation2 + $0x178] sm:$0xff] %vm281_vm0, %v1066_v13  ;;  %v1294_v28 = vmax.f32 %v1230_v16, 0.0  ;;  %v1231_v30 = vadd.f32 %v2717_v5, %v1160_v26  ;;  %v396_v33 = vld [vmem:[#allocation2 + $0x190] sm:$0xff]  ;;  %v2052_v44 = vpop.f32.mrb[16].mxu0 }
 0x169   : > { %v1326_v29 = vmax.f32 %v1262_v17, 0.0  ;;  %v1263_v31 = vadd.f32 %v2717_v5, %v1192_v27  ;;  %1097 = vst.msk [vmem:[#allocation2 + $0x68] sm:$0xff] %vm281_vm0, %v1032_v20  ;;  %1129 = vst.msk [vmem:[#allocation2 + $0x168] sm:$0xff] %vm281_vm0, %v1064_v21  ;;  %v1924_v34 = vpack.c.bf16 %v1296_v22, %v1296_v22  ;;  %v1956_v35 = vpack.c.bf16 %v1328_v23, %v1328_v23  ;;  %v362_v38 = vld [vmem:[#allocation2 + $0x80] sm:$0xff]  ;;  %v2084_v45 = vpop.f32.mrb[16].mxu1  ;;  %v365_v46 = vld [vmem:[#allocation2 + $0x98] sm:$0xff] }
 0x16a   : > { %v1297_v36 = vmax.f32 %v1233_v24, 0.0  ;;  %v1329_v37 = vmax.f32 %v1265_v25, 0.0  ;;  %v394_v39 = vld [vmem:[#allocation2 + $0x180] sm:$0xff]  ;;  %v1922_v40 = vpack.c.bf16 %v1294_v28, %v1294_v28  ;;  %v1295_v42 = vmax.f32 %v1231_v30, 0.0  ;;  %v397_v47 = vld [vmem:[#allocation2 + $0x198] sm:$0xff]  ;;  %v828_v52 = vpop.f32.mrb[17].mxu0 }
 0x16b   : > { %v1954_v41 = vpack.c.bf16 %v1326_v29, %v1326_v29  ;;  %v1327_v43 = vmax.f32 %v1263_v31, 0.0  ;;  %1617 = vst.msk [vmem:[%s2735_s19 + $0x28] sm:$0xf] %vm1606_vm1, %v1924_v34  ;;  %1649 = vst.msk [vmem:[%s2735_s19 + $0xa8] sm:$0xf] %vm1606_vm1, %v1956_v35  ;;  %v1037_v50 = vadd.f32 %v2052_v44, %v364_v32  ;;  %v1069_v51 = vadd.f32 %v2084_v45, %v396_v33  ;;  %v956_v53 = vpop.f32.mrb[17].mxu1 }
 0x16c   : > { %v1925_v48 = vpack.c.bf16 %v1297_v36, %v1297_v36  ;;  %v1957_v49 = vpack.c.bf16 %v1329_v37, %v1329_v37  ;;  %v363_v54 = vld [vmem:[#allocation2 + $0x88] sm:$0xff]  ;;  %1615 = vst.msk [vmem:[%s2735_s19 + $0x20] sm:$0xf] %vm1606_vm1, %v1922_v40  ;;  %v1923_v56 = vpack.c.bf16 %v1295_v42, %v1295_v42  ;;  %v1165_v58 = vld [vmem:[#allocation2 + $0x70] sm:$0xff]  ;;  %v1035_v60 = vadd.f32 %v828_v52, %v362_v38  ;;  %v2053_v62 = vpop.f32.mrb[18].mxu0  ;;  %v2085_v63 = vpop.f32.mrb[18].mxu1 }
 0x16d   : > { %v395_v55 = vld [vmem:[#allocation2 + $0x188] sm:$0xff]  ;;  %1647 = vst.msk [vmem:[%s2735_s19 + $0xa0] sm:$0xf] %vm1606_vm1, %v1954_v41  ;;  %v1955_v57 = vpack.c.bf16 %v1327_v43, %v1327_v43  ;;  %v1197_v59 = vld [vmem:[#allocation2 + $0x170] sm:$0xff]  ;;  %v1067_v61 = vadd.f32 %v956_v53, %v394_v39  ;;  %v1236_v0 = vadd.f32 %v2717_v5, %v1165_v58  ;;  %v1038_v4 = vadd.f32 %v2053_v62, %v365_v46  ;;  %v831_v7 = vpop.f32.mrb[19].mxu0  ;;  %v959_v8 = vpop.f32.mrb[19].mxu1 }
 0x16e   : > { %1618 = vst.msk [vmem:[%s2735_s19 + $0x2c] sm:$0xf] %vm1606_vm1, %v1925_v48  ;;  %1650 = vst.msk [vmem:[%s2735_s19 + $0xac] sm:$0xf] %vm1606_vm1, %v1957_v49  ;;  %v1268_v1 = vadd.f32 %v2717_v5, %v1197_v59  ;;  %v1163_v2 = vld [vmem:[#allocation2 + $0x60] sm:$0xff]  ;;  %v1070_v6 = vadd.f32 %v2085_v63, %v397_v47  ;;  %v1036_v13 = vadd.f32 %v831_v7, %v363_v54  ;;  %v368_v25 = vld [vmem:[#allocation2 + $0xb0] sm:$0xff] }
 0x16f   : > { %v1195_v3 = vld [vmem:[#allocation2 + $0x160] sm:$0xff]  ;;  %1102 = vst.msk [vmem:[#allocation2 + $0x90] sm:$0xff] %vm281_vm0, %v1037_v50  ;;  %1134 = vst.msk [vmem:[#allocation2 + $0x190] sm:$0xff] %vm281_vm0, %v1069_v51  ;;  %v1234_v9 = vadd.f32 %v2717_v5, %v1163_v2  ;;  %v1166_v11 = vld [vmem:[#allocation2 + $0x78] sm:$0xff]  ;;  %v1068_v14 = vadd.f32 %v959_v8, %v395_v55  ;;  %v1300_v15 = vmax.f32 %v1236_v0, 0.0  ;;  %v2056_v37 = vpop.f32.mrb[20].mxu0 }
 0x170   : > { %1616 = vst.msk [vmem:[%s2735_s19 + $0x24] sm:$0xf] %vm1606_vm1, %v1923_v56  ;;  %1648 = vst.msk [vmem:[%s2735_s19 + $0xa4] sm:$0xf] %vm1606_vm1, %v1955_v57  ;;  %v1266_v10 = vadd.f32 %v2717_v5, %v1195_v3  ;;  %v1198_v12 = vld [vmem:[#allocation2 + $0x178] sm:$0xff]  ;;  %v1332_v16 = vmax.f32 %v1268_v1, 0.0  ;;  %v1237_v17 = vadd.f32 %v2717_v5, %v1166_v11  ;;  %v1041_v43 = vadd.f32 %v2056_v37, %v368_v25 }
 0x171   : > { %1100 = vst.msk [vmem:[#allocation2 + $0x80] sm:$0xff] %vm281_vm0, %v1035_v60  ;;  %1132 = vst.msk [vmem:[#allocation2 + $0x180] sm:$0xff] %vm281_vm0, %v1067_v61  ;;  %v1269_v18 = vadd.f32 %v2717_v5, %v1198_v12  ;;  %v1164_v19 = vld [vmem:[#allocation2 + $0x68] sm:$0xff]  ;;  %v1298_v21 = vmax.f32 %v1234_v9, 0.0  ;;  %v400_v26 = vld [vmem:[#allocation2 + $0x1b0] sm:$0xff]  ;;  %v1928_v27 = vpack.c.bf16 %v1300_v15, %v1300_v15  ;;  %v2088_v38 = vpop.f32.mrb[20].mxu1 }
 0x172   : > { %v1196_v20 = vld [vmem:[#allocation2 + $0x168] sm:$0xff]  ;;  %1103 = vst.msk [vmem:[#allocation2 + $0x98] sm:$0xff] %vm281_vm0, %v1038_v4  ;;  %1135 = vst.msk [vmem:[#allocation2 + $0x198] sm:$0xff] %vm281_vm0, %v1070_v6  ;;  %v1330_v22 = vmax.f32 %v1266_v10, 0.0  ;;  %v1235_v23 = vadd.f32 %v2717_v5, %v1164_v19  ;;  %v1960_v28 = vpack.c.bf16 %v1332_v16, %v1332_v16  ;;  %v1301_v29 = vmax.f32 %v1237_v17, 0.0  ;;  %v366_v31 = vld [vmem:[#allocation2 + $0xa0] sm:$0xff] }
 0x173   : > { %v1267_v24 = vadd.f32 %v2717_v5, %v1196_v20  ;;  %1101 = vst.msk [vmem:[#allocation2 + $0x88] sm:$0xff] %vm281_vm0, %v1036_v13  ;;  %1133 = vst.msk [vmem:[#allocation2 + $0x188] sm:$0xff] %vm281_vm0, %v1068_v14  ;;  %v1333_v30 = vmax.f32 %v1269_v18, 0.0  ;;  %v398_v32 = vld [vmem:[#allocation2 + $0x1a0] sm:$0xff]  ;;  %v1926_v33 = vpack.c.bf16 %v1298_v21, %v1298_v21  ;;  %v369_v39 = vld [vmem:[#allocation2 + $0xb8] sm:$0xff]  ;;  %v1073_v44 = vadd.f32 %v2088_v38, %v400_v26  ;;  %v844_v45 = vpop.f32.mrb[21].mxu0 }
 0x174   : > { %v1958_v34 = vpack.c.bf16 %v1330_v22, %v1330_v22  ;;  %v1299_v35 = vmax.f32 %v1235_v23, 0.0  ;;  %v401_v40 = vld [vmem:[#allocation2 + $0x1b8] sm:$0xff]  ;;  %1621 = vst.msk [vmem:[%s2735_s19 + $0x38] sm:$0xf] %vm1606_vm1, %v1928_v27  ;;  %1653 = vst.msk [vmem:[%s2735_s19 + $0xb8] sm:$0xf] %vm1606_vm1, %v1960_v28  ;;  %v1929_v41 = vpack.c.bf16 %v1301_v29, %v1301_v29  ;;  %v1039_v53 = vadd.f32 %v844_v45, %v366_v31 }
 0x175   : > { %v1331_v36 = vmax.f32 %v1267_v24, 0.0  ;;  %v1961_v42 = vpack.c.bf16 %v1333_v30, %v1333_v30  ;;  %v972_v46 = vpop.f32.mrb[21].mxu1  ;;  %v367_v47 = vld [vmem:[#allocation2 + $0xa8] sm:$0xff]  ;;  %1619 = vst.msk [vmem:[%s2735_s19 + $0x30] sm:$0xf] %vm1606_vm1, %v1926_v33  ;;  %v2057_v55 = vpop.f32.mrb[22].mxu0 }
 0x176   : > { %v399_v48 = vld [vmem:[#allocation2 + $0x1a8] sm:$0xff]  ;;  %1651 = vst.msk [vmem:[%s2735_s19 + $0xb0] sm:$0xf] %vm1606_vm1, %v1958_v34  ;;  %v1927_v49 = vpack.c.bf16 %v1299_v35, %v1299_v35  ;;  %v1169_v51 = vld [vmem:[#allocation2 + $0x90] sm:$0xff]  ;;  %v1071_v54 = vadd.f32 %v972_v46, %v398_v32  ;;  %v2089_v56 = vpop.f32.mrb[22].mxu1  ;;  %v1042_v61 = vadd.f32 %v2057_v55, %v369_v39  ;;  %v847_v63 = vpop.f32.mrb[23].mxu0 }
 0x177   : > { %v1959_v50 = vpack.c.bf16 %v1331_v36, %v1331_v36  ;;  %v1201_v52 = vld [vmem:[#allocation2 + $0x190] sm:$0xff]  ;;  %1622 = vst.msk [vmem:[%s2735_s19 + $0x3c] sm:$0xf] %vm1606_vm1, %v1929_v41  ;;  %1654 = vst.msk [vmem:[%s2735_s19 + $0xbc] sm:$0xf] %vm1606_vm1, %v1961_v42  ;;  %v1240_v57 = vadd.f32 %v2717_v5, %v1169_v51  ;;  %v1074_v62 = vadd.f32 %v2089_v56, %v401_v40  ;;  %v975_v0 = vpop.f32.mrb[23].mxu1 }
 0x178   : > { %v1272_v58 = vadd.f32 %v2717_v5, %v1201_v52  ;;  %v1167_v59 = vld [vmem:[#allocation2 + $0x80] sm:$0xff]  ;;  %1106 = vst.msk [vmem:[#allocation2 + $0xb0] sm:$0xff] %vm281_vm0, %v1041_v43  ;;  %1138 = vst.msk [vmem:[#allocation2 + $0x1b0] sm:$0xff] %vm281_vm0, %v1073_v44  ;;  %v1040_v6 = vadd.f32 %v847_v63, %v367_v47  ;;  %v1072_v7 = vadd.f32 %v975_v0, %v399_v48  ;;  %v372_v18 = vld [vmem:[#allocation2 + $0xd0] sm:$0xff]  ;;  %v2060_v30 = vpop.f32.mrb[24].mxu0  ;;  %v2092_v31 = vpop.f32.mrb[24].mxu1 }
 0x179   : > { %v1199_v60 = vld [vmem:[#allocation2 + $0x180] sm:$0xff]  ;;  %1620 = vst.msk [vmem:[%s2735_s19 + $0x34] sm:$0xf] %vm1606_vm1, %v1927_v49  ;;  %1652 = vst.msk [vmem:[%s2735_s19 + $0xb4] sm:$0xf] %vm1606_vm1, %v1959_v50  ;;  %v1238_v1 = vadd.f32 %v2717_v5, %v1167_v59  ;;  %v1170_v3 = vld [vmem:[#allocation2 + $0x98] sm:$0xff]  ;;  %v1045_v36 = vadd.f32 %v2060_v30, %v372_v18 }
 0x17a   : > { %v1270_v2 = vadd.f32 %v2717_v5, %v1199_v60  ;;  %v1202_v4 = vld [vmem:[#allocation2 + $0x198] sm:$0xff]  ;;  %1104 = vst.msk [vmem:[#allocation2 + $0xa0] sm:$0xff] %vm281_vm0, %v1039_v53  ;;  %1136 = vst.msk [vmem:[#allocation2 + $0x1a0] sm:$0xff] %vm281_vm0, %v1071_v54  ;;  %v1304_v8 = vmax.f32 %v1240_v57, 0.0  ;;  %v1336_v9 = vmax.f32 %v1272_v58, 0.0  ;;  %v1241_v10 = vadd.f32 %v2717_v5, %v1170_v3  ;;  %v1168_v12 = vld [vmem:[#allocation2 + $0x88] sm:$0xff] }
 0x17b   : > { %v1273_v11 = vadd.f32 %v2717_v5, %v1202_v4  ;;  %v1200_v13 = vld [vmem:[#allocation2 + $0x188] sm:$0xff]  ;;  %1107 = vst.msk [vmem:[#allocation2 + $0xb8] sm:$0xff] %vm281_vm0, %v1042_v61  ;;  %1139 = vst.msk [vmem:[#allocation2 + $0x1b8] sm:$0xff] %vm281_vm0, %v1074_v62  ;;  %v1302_v14 = vmax.f32 %v1238_v1, 0.0  ;;  %v1239_v16 = vadd.f32 %v2717_v5, %v1168_v12  ;;  %v404_v19 = vld [vmem:[#allocation2 + $0x1d0] sm:$0xff]  ;;  %v860_v38 = vpop.f32.mrb[25].mxu0 }
 0x17c   : > { %v1334_v15 = vmax.f32 %v1270_v2, 0.0  ;;  %v1271_v17 = vadd.f32 %v2717_v5, %v1200_v13  ;;  %1105 = vst.msk [vmem:[#allocation2 + $0xa8] sm:$0xff] %vm281_vm0, %v1040_v6  ;;  %1137 = vst.msk [vmem:[#allocation2 + $0x1a8] sm:$0xff] %vm281_vm0, %v1072_v7  ;;  %v1932_v20 = vpack.c.bf16 %v1304_v8, %v1304_v8  ;;  %v1964_v21 = vpack.c.bf16 %v1336_v9, %v1336_v9  ;;  %v370_v24 = vld [vmem:[#allocation2 + $0xc0] sm:$0xff]  ;;  %v373_v32 = vld [vmem:[#allocation2 + $0xd8] sm:$0xff]  ;;  %v988_v39 = vpop.f32.mrb[25].mxu1 }
 0x17d   : > { %v1305_v22 = vmax.f32 %v1241_v10, 0.0  ;;  %v1337_v23 = vmax.f32 %v1273_v11, 0.0  ;;  %v402_v25 = vld [vmem:[#allocation2 + $0x1c0] sm:$0xff]  ;;  %v1930_v26 = vpack.c.bf16 %v1302_v14, %v1302_v14  ;;  %v1303_v28 = vmax.f32 %v1239_v16, 0.0  ;;  %v405_v33 = vld [vmem:[#allocation2 + $0x1d8] sm:$0xff]  ;;  %v371_v40 = vld [vmem:[#allocation2 + $0xc8] sm:$0xff] }
 0x17e   : > { %v1962_v27 = vpack.c.bf16 %v1334_v15, %v1334_v15  ;;  %v1335_v29 = vmax.f32 %v1271_v17, 0.0  ;;  %1625 = vst.msk [vmem:[%s2735_s19 + $0x48] sm:$0xf] %vm1606_vm1, %v1932_v20  ;;  %1657 = vst.msk [vmem:[%s2735_s19 + $0xc8] sm:$0xf] %vm1606_vm1, %v1964_v21  ;;  %v1077_v37 = vadd.f32 %v2092_v31, %v404_v19  ;;  %v403_v41 = vld [vmem:[#allocation2 + $0x1c8] sm:$0xff]  ;;  %v1043_v46 = vadd.f32 %v860_v38, %v370_v24 }
 0x17f   : > { %v1933_v34 = vpack.c.bf16 %v1305_v22, %v1305_v22  ;;  %v1965_v35 = vpack.c.bf16 %v1337_v23, %v1337_v23  ;;  %1623 = vst.msk [vmem:[%s2735_s19 + $0x40] sm:$0xf] %vm1606_vm1, %v1930_v26  ;;  %v1931_v42 = vpack.c.bf16 %v1303_v28, %v1303_v28  ;;  %v1173_v44 = vld [vmem:[#allocation2 + $0xb0] sm:$0xff]  ;;  %v1075_v47 = vadd.f32 %v988_v39, %v402_v25  ;;  %v2061_v48 = vpop.f32.mrb[26].mxu0  ;;  %v2093_v49 = vpop.f32.mrb[26].mxu1  ;;  %v374_v17 = vld [vmem:[#allocation2 + $0xe0] sm:$0xff] }
 0x180   : > { %1655 = vst.msk [vmem:[%s2735_s19 + $0xc0] sm:$0xf] %vm1606_vm1, %v1962_v27  ;;  %v1963_v43 = vpack.c.bf16 %v1335_v29, %v1335_v29  ;;  %v1205_v45 = vld [vmem:[#allocation2 + $0x1b0] sm:$0xff]  ;;  %v1244_v50 = vadd.f32 %v2717_v5, %v1173_v44  ;;  %v1046_v54 = vadd.f32 %v2061_v48, %v373_v32  ;;  %v1078_v55 = vadd.f32 %v2093_v49, %v405_v33  ;;  %v863_v56 = vpop.f32.mrb[27].mxu0  ;;  %v991_v57 = vpop.f32.mrb[27].mxu1  ;;  %v406_v18 = vld [vmem:[#allocation2 + $0x1e0] sm:$0xff] }
 0x181   : > { %1626 = vst.msk [vmem:[%s2735_s19 + $0x4c] sm:$0xf] %vm1606_vm1, %v1933_v34  ;;  %1658 = vst.msk [vmem:[%s2735_s19 + $0xcc] sm:$0xf] %vm1606_vm1, %v1965_v35  ;;  %v1276_v51 = vadd.f32 %v2717_v5, %v1205_v45  ;;  %v1171_v52 = vld [vmem:[#allocation2 + $0xa0] sm:$0xff]  ;;  %v1044_v62 = vadd.f32 %v863_v56, %v371_v40  ;;  %v1076_v63 = vadd.f32 %v991_v57, %v403_v41  ;;  %v376_v11 = vld [vmem:[#allocation2 + $0xf0] sm:$0xff] }
 0x182   : > { %v1203_v53 = vld [vmem:[#allocation2 + $0x1a0] sm:$0xff]  ;;  %1110 = vst.msk [vmem:[#allocation2 + $0xd0] sm:$0xff] %vm281_vm0, %v1045_v36  ;;  %1142 = vst.msk [vmem:[#allocation2 + $0x1d0] sm:$0xff] %vm281_vm0, %v1077_v37  ;;  %v1242_v58 = vadd.f32 %v2717_v5, %v1171_v52  ;;  %v1174_v60 = vld [vmem:[#allocation2 + $0xb8] sm:$0xff]  ;;  %v1308_v0 = vmax.f32 %v1244_v50, 0.0  ;;  %v2064_v23 = vpop.f32.mrb[28].mxu0 }
 0x183   : > { %1624 = vst.msk [vmem:[%s2735_s19 + $0x44] sm:$0xf] %vm1606_vm1, %v1931_v42  ;;  %1656 = vst.msk [vmem:[%s2735_s19 + $0xc4] sm:$0xf] %vm1606_vm1, %v1963_v43  ;;  %v1274_v59 = vadd.f32 %v2717_v5, %v1203_v53  ;;  %v1206_v61 = vld [vmem:[#allocation2 + $0x1b8] sm:$0xff]  ;;  %v1340_v1 = vmax.f32 %v1276_v51, 0.0  ;;  %v1245_v2 = vadd.f32 %v2717_v5, %v1174_v60  ;;  %v1049_v29 = vadd.f32 %v2064_v23, %v376_v11 }
 0x184   : > { %1108 = vst.msk [vmem:[#allocation2 + $0xc0] sm:$0xff] %vm281_vm0, %v1043_v46  ;;  %1140 = vst.msk [vmem:[#allocation2 + $0x1c0] sm:$0xff] %vm281_vm0, %v1075_v47  ;;  %v1277_v3 = vadd.f32 %v2717_v5, %v1206_v61  ;;  %v1172_v4 = vld [vmem:[#allocation2 + $0xa8] sm:$0xff]  ;;  %v1306_v7 = vmax.f32 %v1242_v58, 0.0  ;;  %v408_v12 = vld [vmem:[#allocation2 + $0x1f0] sm:$0xff]  ;;  %v1936_v13 = vpack.c.bf16 %v1308_v0, %v1308_v0  ;;  %v2096_v24 = vpop.f32.mrb[28].mxu1 }
 0x185   : > { %v1204_v6 = vld [vmem:[#allocation2 + $0x1a8] sm:$0xff]  ;;  %1111 = vst.msk [vmem:[#allocation2 + $0xd8] sm:$0xff] %vm281_vm0, %v1046_v54  ;;  %1143 = vst.msk [vmem:[#allocation2 + $0x1d8] sm:$0xff] %vm281_vm0, %v1078_v55  ;;  %v1338_v8 = vmax.f32 %v1274_v59, 0.0  ;;  %v1243_v9 = vadd.f32 %v2717_v5, %v1172_v4  ;;  %v1968_v14 = vpack.c.bf16 %v1340_v1, %v1340_v1  ;;  %v1309_v15 = vmax.f32 %v1245_v2, 0.0  ;;  %v377_v25 = vld [vmem:[#allocation2 + $0xf8] sm:$0xff] }
 0x186   : > { %v1275_v10 = vadd.f32 %v2717_v5, %v1204_v6  ;;  %1109 = vst.msk [vmem:[#allocation2 + $0xc8] sm:$0xff] %vm281_vm0, %v1044_v62  ;;  %1141 = vst.msk [vmem:[#allocation2 + $0x1c8] sm:$0xff] %vm281_vm0, %v1076_v63  ;;  %v1341_v16 = vmax.f32 %v1277_v3, 0.0  ;;  %v1934_v19 = vpack.c.bf16 %v1306_v7, %v1306_v7  ;;  %v409_v26 = vld [vmem:[#allocation2 + $0x1f8] sm:$0xff]  ;;  %v1081_v30 = vadd.f32 %v2096_v24, %v408_v12  ;;  %v876_v31 = vpop.f32.mrb[29].mxu0  ;;  %v1004_v32 = vpop.f32.mrb[29].mxu1 }
 0x187   : > { %v1966_v20 = vpack.c.bf16 %v1338_v8, %v1338_v8  ;;  %v1307_v21 = vmax.f32 %v1243_v9, 0.0  ;;  %1629 = vst.msk [vmem:[%s2735_s19 + $0x58] sm:$0xf] %vm1606_vm1, %v1936_v13  ;;  %1661 = vst.msk [vmem:[%s2735_s19 + $0xd8] sm:$0xf] %vm1606_vm1, %v1968_v14  ;;  %v1937_v27 = vpack.c.bf16 %v1309_v15, %v1309_v15  ;;  %v375_v33 = vld [vmem:[#allocation2 + $0xe8] sm:$0xff]  ;;  %v1047_v39 = vadd.f32 %v876_v31, %v374_v17 }
 0x188   : > { %v1339_v22 = vmax.f32 %v1275_v10, 0.0  ;;  %v1969_v28 = vpack.c.bf16 %v1341_v16, %v1341_v16  ;;  %v407_v34 = vld [vmem:[#allocation2 + $0x1e8] sm:$0xff]  ;;  %1627 = vst.msk [vmem:[%s2735_s19 + $0x50] sm:$0xf] %vm1606_vm1, %v1934_v19  ;;  %v1079_v40 = vadd.f32 %v1004_v32, %v406_v18  ;;  %v2065_v41 = vpop.f32.mrb[30].mxu0  ;;  %v2097_v42 = vpop.f32.mrb[30].mxu1 }
 0x189   : > { %1659 = vst.msk [vmem:[%s2735_s19 + $0xd0] sm:$0xf] %vm1606_vm1, %v1966_v20  ;;  %v1935_v35 = vpack.c.bf16 %v1307_v21, %v1307_v21  ;;  %v1177_v37 = vld [vmem:[#allocation2 + $0xd0] sm:$0xff]  ;;  %1630 = vst.msk [vmem:[%s2735_s19 + $0x5c] sm:$0xf] %vm1606_vm1, %v1937_v27  ;;  %v1050_v47 = vadd.f32 %v2065_v41, %v377_v25  ;;  %v1082_v48 = vadd.f32 %v2097_v42, %v409_v26  ;;  %v879_v49 = vpop.f32.mrb[31].mxu0 }
 0x18a   : > { %v1967_v36 = vpack.c.bf16 %v1339_v22, %v1339_v22  ;;  %v1209_v38 = vld [vmem:[#allocation2 + $0x1d0] sm:$0xff]  ;;  %1662 = vst.msk [vmem:[%s2735_s19 + $0xdc] sm:$0xf] %vm1606_vm1, %v1969_v28  ;;  %v1248_v43 = vadd.f32 %v2717_v5, %v1177_v37  ;;  %v1007_v50 = vpop.f32.mrb[31].mxu1  ;;  %v1048_v55 = vadd.f32 %v879_v49, %v375_v33  ;;  %v2223_v28 = vld [vmem:[#allocation5] ss:$0 sm:$0xff] }
 0x18b   : > { %v1280_v44 = vadd.f32 %v2717_v5, %v1209_v38  ;;  %v1175_v45 = vld [vmem:[#allocation2 + $0xc0] sm:$0xff]  ;;  %1114 = vst.msk [vmem:[#allocation2 + $0xf0] sm:$0xff] %vm281_vm0, %v1049_v29  ;;  %1146 = vst.msk [vmem:[#allocation2 + $0x1f0] sm:$0xff] %vm281_vm0, %v1081_v30  ;;  %v1080_v56 = vadd.f32 %v1007_v50, %v407_v34 }
 0x18c   : > { %v1207_v46 = vld [vmem:[#allocation2 + $0x1c0] sm:$0xff]  ;;  %1628 = vst.msk [vmem:[%s2735_s19 + $0x54] sm:$0xf] %vm1606_vm1, %v1935_v35  ;;  %1660 = vst.msk [vmem:[%s2735_s19 + $0xd4] sm:$0xf] %vm1606_vm1, %v1967_v36  ;;  %v1246_v51 = vadd.f32 %v2717_v5, %v1175_v45  ;;  %v1178_v53 = vld [vmem:[#allocation2 + $0xd8] sm:$0xff] }
 0x18d   : > { %v1278_v52 = vadd.f32 %v2717_v5, %v1207_v46  ;;  %v1210_v54 = vld [vmem:[#allocation2 + $0x1d8] sm:$0xff]  ;;  %1112 = vst.msk [vmem:[#allocation2 + $0xe0] sm:$0xff] %vm281_vm0, %v1047_v39  ;;  %1144 = vst.msk [vmem:[#allocation2 + $0x1e0] sm:$0xff] %vm281_vm0, %v1079_v40  ;;  %v1312_v57 = vmax.f32 %v1248_v43, 0.0  ;;  %v1344_v58 = vmax.f32 %v1280_v44, 0.0  ;;  %v1249_v59 = vadd.f32 %v2717_v5, %v1178_v53  ;;  %v1176_v61 = vld [vmem:[#allocation2 + $0xc8] sm:$0xff] }
 0x18e   : > { %v1281_v60 = vadd.f32 %v2717_v5, %v1210_v54  ;;  %v1208_v62 = vld [vmem:[#allocation2 + $0x1c8] sm:$0xff]  ;;  %1115 = vst.msk [vmem:[#allocation2 + $0xf8] sm:$0xff] %vm281_vm0, %v1050_v47  ;;  %1147 = vst.msk [vmem:[#allocation2 + $0x1f8] sm:$0xff] %vm281_vm0, %v1082_v48  ;;  %v1310_v63 = vmax.f32 %v1246_v51, 0.0  ;;  %v1247_v1 = vadd.f32 %v2717_v5, %v1176_v61 }
 0x18f   : > { %v1342_v0 = vmax.f32 %v1278_v52, 0.0  ;;  %v1279_v2 = vadd.f32 %v2717_v5, %v1208_v62  ;;  %1113 = vst.msk [vmem:[#allocation2 + $0xe8] sm:$0xff] %vm281_vm0, %v1048_v55  ;;  %1145 = vst.msk [vmem:[#allocation2 + $0x1e8] sm:$0xff] %vm281_vm0, %v1080_v56  ;;  %v1940_v3 = vpack.c.bf16 %v1312_v57, %v1312_v57  ;;  %v1972_v4 = vpack.c.bf16 %v1344_v58, %v1344_v58 }
 0x190   : > { %v1313_v6 = vmax.f32 %v1249_v59, 0.0  ;;  %v1345_v7 = vmax.f32 %v1281_v60, 0.0  ;;  %v1938_v8 = vpack.c.bf16 %v1310_v63, %v1310_v63  ;;  %v1311_v10 = vmax.f32 %v1247_v1, 0.0 }
 0x191   : > { %v1970_v9 = vpack.c.bf16 %v1342_v0, %v1342_v0  ;;  %v1343_v11 = vmax.f32 %v1279_v2, 0.0  ;;  %1633 = vst.msk [vmem:[%s2735_s19 + $0x68] sm:$0xf] %vm1606_vm1, %v1940_v3  ;;  %1665 = vst.msk [vmem:[%s2735_s19 + $0xe8] sm:$0xf] %vm1606_vm1, %v1972_v4 }
 0x192   : > { %v1941_v12 = vpack.c.bf16 %v1313_v6, %v1313_v6  ;;  %v1973_v13 = vpack.c.bf16 %v1345_v7, %v1345_v7  ;;  %1631 = vst.msk [vmem:[%s2735_s19 + $0x60] sm:$0xf] %vm1606_vm1, %v1938_v8  ;;  %v1939_v14 = vpack.c.bf16 %v1311_v10, %v1311_v10  ;;  %v1181_v16 = vld [vmem:[#allocation2 + $0xf0] sm:$0xff] }
 0x193   : > { %1663 = vst.msk [vmem:[%s2735_s19 + $0xe0] sm:$0xf] %vm1606_vm1, %v1970_v9  ;;  %v1971_v15 = vpack.c.bf16 %v1343_v11, %v1343_v11  ;;  %v1213_v17 = vld [vmem:[#allocation2 + $0x1f0] sm:$0xff]  ;;  %v1252_v18 = vadd.f32 %v2717_v5, %v1181_v16 }
 0x194   : > { %1634 = vst.msk [vmem:[%s2735_s19 + $0x6c] sm:$0xf] %vm1606_vm1, %v1941_v12  ;;  %1666 = vst.msk [vmem:[%s2735_s19 + $0xec] sm:$0xf] %vm1606_vm1, %v1973_v13  ;;  %v1284_v19 = vadd.f32 %v2717_v5, %v1213_v17  ;;  %v1179_v20 = vld [vmem:[#allocation2 + $0xe0] sm:$0xff] }
 0x195   : > { %v1211_v21 = vld [vmem:[#allocation2 + $0x1e0] sm:$0xff]  ;;  %1632 = vst.msk [vmem:[%s2735_s19 + $0x64] sm:$0xf] %vm1606_vm1, %v1939_v14  ;;  %1664 = vst.msk [vmem:[%s2735_s19 + $0xe4] sm:$0xf] %vm1606_vm1, %v1971_v15  ;;  %v1250_v22 = vadd.f32 %v2717_v5, %v1179_v20  ;;  %v1182_v24 = vld [vmem:[#allocation2 + $0xf8] sm:$0xff] }
 0x196   : > { %v1282_v23 = vadd.f32 %v2717_v5, %v1211_v21  ;;  %v1214_v25 = vld [vmem:[#allocation2 + $0x1f8] sm:$0xff]  ;;  %v1316_v26 = vmax.f32 %v1252_v18, 0.0  ;;  %v1348_v27 = vmax.f32 %v1284_v19, 0.0  ;;  %v1253_v29 = vadd.f32 %v2223_v28, %v1182_v24  ;;  %v1180_v31 = vld [vmem:[#allocation2 + $0xe8] sm:$0xff] }
 0x197   : > { %v1285_v30 = vadd.f32 %v2223_v28, %v1214_v25  ;;  %v1212_v32 = vld [vmem:[#allocation2 + $0x1e8] sm:$0xff]  ;;  %v1314_v33 = vmax.f32 %v1250_v22, 0.0  ;;  %v1251_v35 = vadd.f32 %v2223_v28, %v1180_v31 }
 0x198   : > { %v1346_v34 = vmax.f32 %v1282_v23, 0.0  ;;  %v1283_v36 = vadd.f32 %v2223_v28, %v1212_v32  ;;  %v1944_v37 = vpack.c.bf16 %v1316_v26, %v1316_v26  ;;  %v1976_v5 = vpack.c.bf16 %v1348_v27, %v1348_v27 }
 0x199   : > { %v1317_v38 = vmax.f32 %v1253_v29, 0.0  ;;  %v1349_v39 = vmax.f32 %v1285_v30, 0.0  ;;  %v1942_v40 = vpack.c.bf16 %v1314_v33, %v1314_v33  ;;  %v1315_v42 = vmax.f32 %v1251_v35, 0.0 }
 0x19a   : > { %v1974_v41 = vpack.c.bf16 %v1346_v34, %v1346_v34  ;;  %v1347_v43 = vmax.f32 %v1283_v36, 0.0  ;;  %1637 = vst.msk [vmem:[%s2735_s19 + $0x78] sm:$0xf] %vm1606_vm1, %v1944_v37  ;;  %1669 = vst.msk [vmem:[%s2735_s19 + $0xf8] sm:$0xf] %vm1606_vm1, %v1976_v5 }
 0x19b   : > { %v1945_v44 = vpack.c.bf16 %v1317_v38, %v1317_v38  ;;  %v1977_v45 = vpack.c.bf16 %v1349_v39, %v1349_v39  ;;  %1635 = vst.msk [vmem:[%s2735_s19 + $0x70] sm:$0xf] %vm1606_vm1, %v1942_v40  ;;  %v1943_v46 = vpack.c.bf16 %v1315_v42, %v1315_v42 }
 0x19c   : > { %1667 = vst.msk [vmem:[%s2735_s19 + $0xf0] sm:$0xf] %vm1606_vm1, %v1974_v41  ;;  %v1975_v47 = vpack.c.bf16 %v1347_v43, %v1347_v43 }
 0x19d   : > { %1638 = vst.msk [vmem:[%s2735_s19 + $0x7c] sm:$0xf] %vm1606_vm1, %v1945_v44  ;;  %1670 = vst.msk [vmem:[%s2735_s19 + $0xfc] sm:$0xf] %vm1606_vm1, %v1977_v45 }
 0x19e   : > { %1636 = vst.msk [vmem:[%s2735_s19 + $0x74] sm:$0xf] %vm1606_vm1, %v1943_v46  ;;  %1668 = vst.msk [vmem:[%s2735_s19 + $0xf4] sm:$0xf] %vm1606_vm1, %v1975_v47 }
 0x19f PF: > { %s17_s17 = sadd.s32 1, %s2336_s17   ;;  %s3007_s20 = smov %s3014_s12 }
 0x1a0   : > { %p14_p4 = scmp.ge.s32.totalorder %s17_s17, 18   ;;  %s3008_s12 = smov %s2320_s13 }
 0x1a1   : > { %s3009_s13 = smov %s2324_s14  ;;  %s3010_s14 = smov %s2497_s7 }
 0x1a2   : > { %s3011_s15 = smov %s2332_s16  ;;  %s3012_s16 = smov %s3007_s20 }
 0x1a3   :  { %16 = sbr.rel (!%p14_p4) target bundleno = 5 (0x5), region = 88 }
 0x1aa   :  { %1699 = vsyncpa [#allocation4], 1 }
 0x1ab   :  { %1701 = vsyncpa [#allocation4 + $0x1], 1 }
 0x1ac   :  { %1702 = vsyncpa [#allocation6], 1 }

</bundles_post_ra>
